<compile_context>
chip_gen: v7x
topology: tpu7x:2x2x1
jax: 0.10.0
libtpu: 0.0.40
codegen_flags: <defaults>
</compile_context>

<pallas_src>
import jax
import jax.numpy as jnp
from jax.experimental import pallas as pl
from jax.experimental.pallas import tpu as pltpu

HIDDEN = 32            # hidden_size (small; module default was 256)
OUTPUT = 40            # output_size (vocabulary size)
GP = 128               # lane-padded embedding row width
GATES = 4 * HIDDEN     # [r | z | i_n | h_n] packed into one 128-lane block
OUT_PAD = 128          # lane-dense padded output width
CHUNK = 8              # timesteps processed per grid step (sublane-aligned)
NEG_BIG = -1e30        # "minus infinity" bias for padded logits


def init_params(key, hidden_size, output_size):
    """PyTorch-shaped synthetic parameters (same shapes as the nn.Module)."""
    ks = jax.random.split(key, 7)
    k = 1.0 / jnp.sqrt(hidden_size)
    return {
        "embedding": jax.random.normal(ks[0], (output_size, hidden_size), jnp.float32),
        "w_ih": jax.random.uniform(ks[1], (3 * hidden_size, hidden_size), jnp.float32, -k, k),
        "w_hh": jax.random.uniform(ks[2], (3 * hidden_size, hidden_size), jnp.float32, -k, k),
        "b_ih": jax.random.uniform(ks[3], (3 * hidden_size,), jnp.float32, -k, k),
        "b_hh": jax.random.uniform(ks[4], (3 * hidden_size,), jnp.float32, -k, k),
        "w_out": jax.random.uniform(ks[5], (output_size, hidden_size), jnp.float32, -k, k),
        "b_out": jax.random.uniform(ks[6], (output_size,), jnp.float32, -k, k),
    }


def prepare_params(params):
    """One-time layout prep (NOT per forward call): transpose, pack the four
    32-wide gates into a single 128-lane block, fold all biases into the
    x-side projection, pre-apply relu to the embedding table, pad the output
    projection to 128 lanes with a -1e30 bias on the padded logits."""
    H, O = HIDDEN, OUTPUT
    w_ih_t = params["w_ih"].T          # (H, 3H), col blocks [r | z | n]
    w_hh_t = params["w_hh"].T          # (H, 3H)
    b_ih, b_hh = params["b_ih"], params["b_hh"]

    # x-side gate weights: rows padded to GP (match 128-lane embedding rows),
    # cols packed [r | z | i_n | 0].
    wx = jnp.zeros((GP, GATES), jnp.float32)
    wx = wx.at[0:H, 0:3 * H].set(w_ih_t)

    # h-side gate weights: cols packed [r | z | 0 | h_n].
    wh = jnp.zeros((H, GATES), jnp.float32)
    wh = wh.at[:, 0:2 * H].set(w_hh_t[:, 0:2 * H])
    wh = wh.at[:, 3 * H:4 * H].set(w_hh_t[:, 2 * H:3 * H])

    # All biases folded into one row, added once with the x-side projection:
    # [b_ir+b_hr | b_iz+b_hz | b_in | b_hn].
    b_all = jnp.concatenate([
        b_ih[0:H] + b_hh[0:H],
        b_ih[H:2 * H] + b_hh[H:2 * H],
        b_ih[2 * H:3 * H],
        b_hh[2 * H:3 * H],
    ]).reshape(1, GATES)

    # Output projection padded to 128 lanes; padded logits biased to -1e30.
    w_out = jnp.zeros((H, OUT_PAD), jnp.float32).at[:, 0:O].set(params["w_out"].T)
    b_out = jnp.full((1, OUT_PAD), NEG_BIG, jnp.float32).at[0, 0:O].set(params["b_out"])

    # Embedding table with relu PRE-APPLIED (relu(E[tok]) depends only on tok),
    # rows padded to 128 lanes for clean full-width dynamic row loads.
    emb = jnp.zeros((O, GP), jnp.float32).at[:, 0:H].set(
        jnp.maximum(params["embedding"], 0.0))

    return {"emb": emb, "wx": wx, "wh": wh, "b_all": b_all,
            "w_out": w_out, "b_out": b_out}


def decoder_rnn_decode(tokens, hidden0, prepped):
    """Apply DecoderRNN.forward sequentially to `tokens` in ONE pallas_call.

    tokens : (T,) int32 token ids
    hidden0: (1, 1, H) float32 initial GRU hidden state
    returns (log_probs (T, OUTPUT), final hidden (1, 1, HIDDEN))
    """
    T = int(tokens.shape[0])
    num_chunks = (T + CHUNK - 1) // CHUNK
    T_pad = num_chunks * CHUNK
    needs_mask = (T_pad != T)

    toks = jnp.zeros((T_pad,), jnp.int32).at[:T].set(tokens.astype(jnp.int32))
    h0 = hidden0.reshape(1, HIDDEN).astype(jnp.float32)

    def kernel(tok_ref, emb_ref, wx_ref, wh_ref, ball_ref, wout_ref, bout_ref,
               h0_ref, logp_ref, hout_ref):
        c = pl.program_id(0)

        # hout (constant block index => VMEM-resident) doubles as the hidden
        # carry across chunks; seed it from h0 on the first chunk.
        @pl.when(c == 0)
        def _():
            hout_ref[...] = h0_ref[...]

        # ---- gather this chunk's embedding rows (relu already applied) ----
        rows = []
        for i in range(CHUNK):
            tok = tok_ref[c * CHUNK + i]
            rows.append(emb_ref[pl.ds(tok, 1), :])          # (1, GP)
        x_chunk = jnp.concatenate(rows, axis=0)             # (CHUNK, GP)

        # ---- batched x-side gate projection (off the serial chain) --------
        gi = jnp.dot(x_chunk, wx_ref[...],
                     preferred_element_type=jnp.float32) + ball_ref[...]  # (CHUNK, GATES)

        # ---- serial GRU recurrence over the chunk --------------------------
        h = hout_ref[...]                                    # (1, H)
        wh = wh_ref[...]                                     # hoisted load
        h_rows = []
        for i in range(CHUNK):
            g = jnp.dot(h, wh, preferred_element_type=jnp.float32) + gi[i:i + 1, :]
            r = jax.nn.sigmoid(g[:, 0:HIDDEN])
            z = jax.nn.sigmoid(g[:, HIDDEN:2 * HIDDEN])
            n = jnp.tanh(g[:, 2 * HIDDEN:3 * HIDDEN] + r * g[:, 3 * HIDDEN:4 * HIDDEN])
            h_new = (1.0 - z) * n + z * h
            if needs_mask:
                keep = ((c * CHUNK + i) < T).astype(jnp.float32)
                h_new = keep * h_new + (1.0 - keep) * h      # freeze h on padded steps
            h = h_new
            h_rows.append(h)
        hout_ref[...] = h

        # ---- batched readout: Linear + LogSoftmax for the whole chunk ------
        hc = jnp.concatenate(h_rows, axis=0)                 # (CHUNK, H)
        logits = jnp.dot(hc, wout_ref[...],
                         preferred_element_type=jnp.float32) + bout_ref[...]
        m = jnp.max(logits, axis=-1, keepdims=True)
        s = logits - m
        lse = jnp.log(jnp.sum(jnp.exp(s), axis=-1, keepdims=True))
        logp_ref[...] = s - lse                              # aligned (8,128) store

    grid_spec = pltpu.PrefetchScalarGridSpec(
        num_scalar_prefetch=1,                               # token ids -> SMEM
        grid=(num_chunks,),
        in_specs=[
            # constant block index -> DMA'd once, VMEM-resident for all chunks
            pl.BlockSpec((OUTPUT, GP), lambda c, tok: (0, 0)),       # embedding table
            pl.BlockSpec((GP, GATES), lambda c, tok: (0, 0)),        # wx
            pl.BlockSpec((HIDDEN, GATES), lambda c, tok: (0, 0)),    # wh
            pl.BlockSpec((1, GATES), lambda c, tok: (0, 0)),         # fused biases
            pl.BlockSpec((HIDDEN, OUT_PAD), lambda c, tok: (0, 0)),  # w_out
            pl.BlockSpec((1, OUT_PAD), lambda c, tok: (0, 0)),       # b_out
            pl.BlockSpec((1, HIDDEN), lambda c, tok: (0, 0)),        # initial hidden
        ],
        out_specs=(
            pl.BlockSpec((CHUNK, OUT_PAD), lambda c, tok: (c, 0)),   # per-chunk log-probs
            pl.BlockSpec((1, HIDDEN), lambda c, tok: (0, 0)),        # hidden carry / final
        ),
    )

    logp_pad, h_final = pl.pallas_call(
        kernel,
        out_shape=(jax.ShapeDtypeStruct((T_pad, OUT_PAD), jnp.float32),
                   jax.ShapeDtypeStruct((1, HIDDEN), jnp.float32)),
        grid_spec=grid_spec,
        compiler_params=pltpu.CompilerParams(
            dimension_semantics=("arbitrary",)),             # sequential: h carries over
    )(toks, prepped["emb"], prepped["wx"], prepped["wh"], prepped["b_all"],
      prepped["w_out"], prepped["b_out"], h0)

    return logp_pad[:T, :OUTPUT], h_final.reshape(1, 1, HIDDEN)


def decoder_rnn_forward(token, hidden, prepped):
    """Single-step mirror of DecoderRNN.forward (thin wrapper over the fused kernel)."""
    logp, h = decoder_rnn_decode(jnp.asarray(token, jnp.int32).reshape(1), hidden, prepped)
    return logp, h


def _reference_decode(tokens, hidden0, params):
    """Pure-JAX reference: apply the PyTorch forward T times."""
    H = HIDDEN
    h = hidden0.reshape(1, H)
    outs = []
    for t in range(tokens.shape[0]):
        x = jnp.maximum(params["embedding"][tokens[t]][None, :], 0.0)
        gi = x @ params["w_ih"].T + params["b_ih"]
        gh = h @ params["w_hh"].T + params["b_hh"]
        i_r, i_z, i_n = gi[:, :H], gi[:, H:2 * H], gi[:, 2 * H:]
        h_r, h_z, h_n = gh[:, :H], gh[:, H:2 * H], gh[:, 2 * H:]
        r = jax.nn.sigmoid(i_r + h_r)
        z = jax.nn.sigmoid(i_z + h_z)
        n = jnp.tanh(i_n + r * h_n)
        h = (1.0 - z) * n + z * h
        logits = h @ params["w_out"].T + params["b_out"]
        outs.append(jax.nn.log_softmax(logits, axis=1))
    return jnp.concatenate(outs, axis=0), h.reshape(1, 1, H)


if __name__ == "__main__":
    key = jax.random.PRNGKey(0)
    pkey, tkey, hkey = jax.random.split(key, 3)

    params = init_params(pkey, HIDDEN, OUTPUT)
    prepped = prepare_params(params)            # one-time layout prep

    # T = 12 exercises both the multi-chunk path and the padded-tail masking.
    T = 12
    tokens = jax.random.randint(tkey, (T,), 0, OUTPUT, dtype=jnp.int32)
    hidden0 = jax.random.normal(hkey, (1, 1, HIDDEN), jnp.float32)

    # Fused multi-step decode (one pallas_call, CHUNK timesteps per grid step).
    logp, h_final = decoder_rnn_decode(tokens, hidden0, prepped)
    jax.block_until_ready((logp, h_final))

    ref_logp, ref_h = _reference_decode(tokens, hidden0, params)
    assert jnp.allclose(logp, ref_logp, atol=1e-4, rtol=1e-4), \
        float(jnp.max(jnp.abs(logp - ref_logp)))
    assert jnp.allclose(h_final, ref_h, atol=1e-4, rtol=1e-4), \
        float(jnp.max(jnp.abs(h_final - ref_h)))

    # Single-step (module.forward) parity check.
    logp1, h1 = decoder_rnn_forward(tokens[0], hidden0, prepped)
    jax.block_until_ready((logp1, h1))
    assert jnp.allclose(logp1, ref_logp[0:1], atol=1e-4, rtol=1e-4)

    # TODO(synk): true autoregressive (greedy/sampled) next-token selection inside
    # the kernel is out of scope of the module's forward(); tokens are given up-front.
    print("KERNEL_OK")
</pallas_src>

<mosaic_0001>
module attributes {stable_mosaic.version = 11 : i64} {
  func.func @kernel(%arg0: i32, %arg1: memref<16xi32, #tpu.memory_space<smem>>, %arg2: memref<40x128xf32, #tpu.memory_space<vmem>>, %arg3: memref<128x128xf32, #tpu.memory_space<vmem>>, %arg4: memref<32x128xf32, #tpu.memory_space<vmem>>, %arg5: memref<1x128xf32, #tpu.memory_space<vmem>>, %arg6: memref<32x128xf32, #tpu.memory_space<vmem>>, %arg7: memref<1x128xf32, #tpu.memory_space<vmem>>, %arg8: memref<1x32xf32, #tpu.memory_space<vmem>>, %arg9: memref<8x128xf32, #tpu.memory_space<vmem>>, %arg10: memref<1x32xf32, #tpu.memory_space<vmem>>) attributes {dimension_semantics = [#tpu.dimension_semantics<arbitrary>], iteration_bounds = array<i64: 2>, scalar_prefetch = 1 : i64, scratch_operands = 0 : i64, tpu.core_type = #tpu.core_type<tc>, window_params = [{pipeline_mode = #tpu.pipeline_mode<synchronous>, transform_indices = @transform_0, window_bounds = array<i64: 40, 128>}, {pipeline_mode = #tpu.pipeline_mode<synchronous>, transform_indices = @transform_1, window_bounds = array<i64: 128, 128>}, {pipeline_mode = #tpu.pipeline_mode<synchronous>, transform_indices = @transform_2, window_bounds = array<i64: 32, 128>}, {pipeline_mode = #tpu.pipeline_mode<synchronous>, transform_indices = @transform_3, window_bounds = array<i64: 1, 128>}, {pipeline_mode = #tpu.pipeline_mode<synchronous>, transform_indices = @transform_4, window_bounds = array<i64: 32, 128>}, {pipeline_mode = #tpu.pipeline_mode<synchronous>, transform_indices = @transform_5, window_bounds = array<i64: 1, 128>}, {pipeline_mode = #tpu.pipeline_mode<synchronous>, transform_indices = @transform_6, window_bounds = array<i64: 1, 32>}, {transform_indices = @transform_7, window_bounds = array<i64: 8, 128>}, {pipeline_mode = #tpu.pipeline_mode<synchronous>, transform_indices = @transform_8, window_bounds = array<i64: 1, 32>}]} {
    %c0_i32 = arith.constant 0 : i32
    %0 = arith.cmpi eq, %arg0, %c0_i32 : i32
    %1 = arith.extui %0 : i1 to i32
    %c0_i32_0 = arith.constant 0 : i32
    %2 = arith.cmpi ne, %1, %c0_i32_0 : i32
    scf.if %2 {
      %c0_98 = arith.constant 0 : index
      %c0_99 = arith.constant 0 : index
      %365 = vector.load %arg8[%c0_98, %c0_99] : memref<1x32xf32, #tpu.memory_space<vmem>>, vector<1x32xf32>
      %c0_100 = arith.constant 0 : index
      %c0_101 = arith.constant 0 : index
      %366 = vector.load %arg10[%c0_100, %c0_101] : memref<1x32xf32, #tpu.memory_space<vmem>>, vector<1x32xf32>
      tpu.vector_store %arg10[%c0_100, %c0_101], %365 {strides = array<i32>} : memref<1x32xf32, #tpu.memory_space<vmem>>, vector<1x32xf32>,
    } else {
    }
    %c8_i32 = arith.constant 8 : i32
    %3 = arith.muli %arg0, %c8_i32 : i32
    %c0_i32_1 = arith.constant 0 : i32
    %4 = arith.addi %3, %c0_i32_1 : i32
    %5 = arith.index_cast %4 : i32 to index
    %6 = memref.load %arg1[%5] : memref<16xi32, #tpu.memory_space<smem>>
    %7 = arith.index_cast %6 : i32 to index
    %c0 = arith.constant 0 : index
    %8 = vector.load %arg2[%7, %c0] : memref<40x128xf32, #tpu.memory_space<vmem>>, vector<1x128xf32>
    %c8_i32_2 = arith.constant 8 : i32
    %9 = arith.muli %arg0, %c8_i32_2 : i32
    %c1_i32 = arith.constant 1 : i32
    %10 = arith.addi %9, %c1_i32 : i32
    %11 = arith.index_cast %10 : i32 to index
    %12 = memref.load %arg1[%11] : memref<16xi32, #tpu.memory_space<smem>>
    %13 = arith.index_cast %12 : i32 to index
    %c0_3 = arith.constant 0 : index
    %14 = vector.load %arg2[%13, %c0_3] : memref<40x128xf32, #tpu.memory_space<vmem>>, vector<1x128xf32>
    %c8_i32_4 = arith.constant 8 : i32
    %15 = arith.muli %arg0, %c8_i32_4 : i32
    %c2_i32 = arith.constant 2 : i32
    %16 = arith.addi %15, %c2_i32 : i32
    %17 = arith.index_cast %16 : i32 to index
    %18 = memref.load %arg1[%17] : memref<16xi32, #tpu.memory_space<smem>>
    %19 = arith.index_cast %18 : i32 to index
    %c0_5 = arith.constant 0 : index
    %20 = vector.load %arg2[%19, %c0_5] : memref<40x128xf32, #tpu.memory_space<vmem>>, vector<1x128xf32>
    %c8_i32_6 = arith.constant 8 : i32
    %21 = arith.muli %arg0, %c8_i32_6 : i32
    %c3_i32 = arith.constant 3 : i32
    %22 = arith.addi %21, %c3_i32 : i32
    %23 = arith.index_cast %22 : i32 to index
    %24 = memref.load %arg1[%23] : memref<16xi32, #tpu.memory_space<smem>>
    %25 = arith.index_cast %24 : i32 to index
    %c0_7 = arith.constant 0 : index
    %26 = vector.load %arg2[%25, %c0_7] : memref<40x128xf32, #tpu.memory_space<vmem>>, vector<1x128xf32>
    %c8_i32_8 = arith.constant 8 : i32
    %27 = arith.muli %arg0, %c8_i32_8 : i32
    %c4_i32 = arith.constant 4 : i32
    %28 = arith.addi %27, %c4_i32 : i32
    %29 = arith.index_cast %28 : i32 to index
    %30 = memref.load %arg1[%29] : memref<16xi32, #tpu.memory_space<smem>>
    %31 = arith.index_cast %30 : i32 to index
    %c0_9 = arith.constant 0 : index
    %32 = vector.load %arg2[%31, %c0_9] : memref<40x128xf32, #tpu.memory_space<vmem>>, vector<1x128xf32>
    %c8_i32_10 = arith.constant 8 : i32
    %33 = arith.muli %arg0, %c8_i32_10 : i32
    %c5_i32 = arith.constant 5 : i32
    %34 = arith.addi %33, %c5_i32 : i32
    %35 = arith.index_cast %34 : i32 to index
    %36 = memref.load %arg1[%35] : memref<16xi32, #tpu.memory_space<smem>>
    %37 = arith.index_cast %36 : i32 to index
    %c0_11 = arith.constant 0 : index
    %38 = vector.load %arg2[%37, %c0_11] : memref<40x128xf32, #tpu.memory_space<vmem>>, vector<1x128xf32>
    %c8_i32_12 = arith.constant 8 : i32
    %39 = arith.muli %arg0, %c8_i32_12 : i32
    %c6_i32 = arith.constant 6 : i32
    %40 = arith.addi %39, %c6_i32 : i32
    %41 = arith.index_cast %40 : i32 to index
    %42 = memref.load %arg1[%41] : memref<16xi32, #tpu.memory_space<smem>>
    %43 = arith.index_cast %42 : i32 to index
    %c0_13 = arith.constant 0 : index
    %44 = vector.load %arg2[%43, %c0_13] : memref<40x128xf32, #tpu.memory_space<vmem>>, vector<1x128xf32>
    %c8_i32_14 = arith.constant 8 : i32
    %45 = arith.muli %arg0, %c8_i32_14 : i32
    %c7_i32 = arith.constant 7 : i32
    %46 = arith.addi %45, %c7_i32 : i32
    %47 = arith.index_cast %46 : i32 to index
    %48 = memref.load %arg1[%47] : memref<16xi32, #tpu.memory_space<smem>>
    %49 = arith.index_cast %48 : i32 to index
    %c0_15 = arith.constant 0 : index
    %50 = vector.load %arg2[%49, %c0_15] : memref<40x128xf32, #tpu.memory_space<vmem>>, vector<1x128xf32>
    %51 = tpu.concatenate %8, %14, %20, %26, %32, %38, %44, %50 in 0 : vector<1x128xf32>, vector<1x128xf32>, vector<1x128xf32>, vector<1x128xf32>, vector<1x128xf32>, vector<1x128xf32>, vector<1x128xf32>, vector<1x128xf32> -> vector<8x128xf32>
    %c0_16 = arith.constant 0 : index
    %c0_17 = arith.constant 0 : index
    %52 = vector.load %arg3[%c0_16, %c0_17] : memref<128x128xf32, #tpu.memory_space<vmem>>, vector<128x128xf32>
    %cst = arith.constant dense<0.000000e+00> : vector<8x128xf32>
    %53 = tpu.matmul %51, %52, %cst {dimension_numbers = #tpu.dot_dimension_numbers<[1], [0], [0], [1], [0, 0, 1, 1], [], []>} : vector<8x128xf32>, vector<128x128xf32>, vector<8x128xf32> -> vector<8x128xf32>
    %c0_18 = arith.constant 0 : index
    %c0_19 = arith.constant 0 : index
    %54 = vector.load %arg5[%c0_18, %c0_19] : memref<1x128xf32, #tpu.memory_space<vmem>>, vector<1x128xf32>
    %55 = vector.broadcast %54 : vector<1x128xf32> to vector<8x128xf32>
    %56 = arith.addf %53, %55 : vector<8x128xf32>
    %c0_20 = arith.constant 0 : index
    %c0_21 = arith.constant 0 : index
    %57 = vector.load %arg10[%c0_20, %c0_21] : memref<1x32xf32, #tpu.memory_space<vmem>>, vector<1x32xf32>
    %c0_22 = arith.constant 0 : index
    %c0_23 = arith.constant 0 : index
    %58 = vector.load %arg4[%c0_22, %c0_23] : memref<32x128xf32, #tpu.memory_space<vmem>>, vector<32x128xf32>
    %cst_24 = arith.constant dense<0.000000e+00> : vector<1x128xf32>
    %59 = tpu.matmul %57, %58, %cst_24 {dimension_numbers = #tpu.dot_dimension_numbers<[1], [0], [0], [1], [0, 0, 1, 1], [], []>} : vector<1x32xf32>, vector<32x128xf32>, vector<1x128xf32> -> vector<1x128xf32>
    %60 = vector.extract_strided_slice %56 {offsets = [0, 0], sizes = [1, 128], strides = [1, 1]} : vector<8x128xf32> to vector<1x128xf32>
    %61 = arith.addf %59, %60 : vector<1x128xf32>
    %62 = vector.extract_strided_slice %61 {offsets = [0, 0], sizes = [1, 32], strides = [1, 1]} : vector<1x128xf32> to vector<1x32xf32>
    %63 = arith.negf %62 : vector<1x32xf32>
    %64 = math.exp %63 : vector<1x32xf32>
    %cst_25 = arith.constant 1.000000e+00 : f32
    %65 = vector.broadcast %cst_25 : f32 to vector<1x32xf32>
    %66 = arith.addf %65, %64 : vector<1x32xf32>
    %67 = arith.divf %65, %66 : vector<1x32xf32>
    %68 = vector.extract_strided_slice %61 {offsets = [0, 32], sizes = [1, 32], strides = [1, 1]} : vector<1x128xf32> to vector<1x32xf32>
    %69 = arith.negf %68 : vector<1x32xf32>
    %70 = math.exp %69 : vector<1x32xf32>
    %cst_26 = arith.constant 1.000000e+00 : f32
    %71 = vector.broadcast %cst_26 : f32 to vector<1x32xf32>
    %72 = arith.addf %71, %70 : vector<1x32xf32>
    %73 = arith.divf %71, %72 : vector<1x32xf32>
    %74 = vector.extract_strided_slice %61 {offsets = [0, 64], sizes = [1, 32], strides = [1, 1]} : vector<1x128xf32> to vector<1x32xf32>
    %75 = vector.extract_strided_slice %61 {offsets = [0, 96], sizes = [1, 32], strides = [1, 1]} : vector<1x128xf32> to vector<1x32xf32>
    %76 = arith.mulf %67, %75 : vector<1x32xf32>
    %77 = arith.addf %74, %76 : vector<1x32xf32>
    %78 = math.tanh %77 : vector<1x32xf32>
    %cst_27 = arith.constant 1.000000e+00 : f32
    %79 = vector.broadcast %cst_27 : f32 to vector<1x32xf32>
    %80 = arith.subf %79, %73 : vector<1x32xf32>
    %81 = arith.mulf %80, %78 : vector<1x32xf32>
    %82 = arith.mulf %73, %57 : vector<1x32xf32>
    %83 = arith.addf %81, %82 : vector<1x32xf32>
    %c8_i32_28 = arith.constant 8 : i32
    %84 = arith.muli %arg0, %c8_i32_28 : i32
    %c0_i32_29 = arith.constant 0 : i32
    %85 = arith.addi %84, %c0_i32_29 : i32
    %c12_i32 = arith.constant 12 : i32
    %86 = arith.cmpi slt, %85, %c12_i32 : i32
    %87 = arith.extui %86 : i1 to i32
    %88 = arith.sitofp %87 : i32 to f32
    %89 = vector.broadcast %88 : f32 to vector<1x32xf32>
    %90 = arith.mulf %89, %83 : vector<1x32xf32>
    %cst_30 = arith.constant 1.000000e+00 : f32
    %91 = arith.subf %cst_30, %88 : f32
    %92 = vector.broadcast %91 : f32 to vector<1x32xf32>
    %93 = arith.mulf %92, %57 : vector<1x32xf32>
    %94 = arith.addf %90, %93 : vector<1x32xf32>
    %cst_31 = arith.constant dense<0.000000e+00> : vector<1x128xf32>
    %95 = tpu.matmul %94, %58, %cst_31 {dimension_numbers = #tpu.dot_dimension_numbers<[1], [0], [0], [1], [0, 0, 1, 1], [], []>} : vector<1x32xf32>, vector<32x128xf32>, vector<1x128xf32> -> vector<1x128xf32>
    %96 = vector.extract_strided_slice %56 {offsets = [1, 0], sizes = [1, 128], strides = [1, 1]} : vector<8x128xf32> to vector<1x128xf32>
    %97 = arith.addf %95, %96 : vector<1x128xf32>
    %98 = vector.extract_strided_slice %97 {offsets = [0, 0], sizes = [1, 32], strides = [1, 1]} : vector<1x128xf32> to vector<1x32xf32>
    %99 = arith.negf %98 : vector<1x32xf32>
    %100 = math.exp %99 : vector<1x32xf32>
    %cst_32 = arith.constant 1.000000e+00 : f32
    %101 = vector.broadcast %cst_32 : f32 to vector<1x32xf32>
    %102 = arith.addf %101, %100 : vector<1x32xf32>
    %103 = arith.divf %101, %102 : vector<1x32xf32>
    %104 = vector.extract_strided_slice %97 {offsets = [0, 32], sizes = [1, 32], strides = [1, 1]} : vector<1x128xf32> to vector<1x32xf32>
    %105 = arith.negf %104 : vector<1x32xf32>
    %106 = math.exp %105 : vector<1x32xf32>
    %cst_33 = arith.constant 1.000000e+00 : f32
    %107 = vector.broadcast %cst_33 : f32 to vector<1x32xf32>
    %108 = arith.addf %107, %106 : vector<1x32xf32>
    %109 = arith.divf %107, %108 : vector<1x32xf32>
    %110 = vector.extract_strided_slice %97 {offsets = [0, 64], sizes = [1, 32], strides = [1, 1]} : vector<1x128xf32> to vector<1x32xf32>
    %111 = vector.extract_strided_slice %97 {offsets = [0, 96], sizes = [1, 32], strides = [1, 1]} : vector<1x128xf32> to vector<1x32xf32>
    %112 = arith.mulf %103, %111 : vector<1x32xf32>
    %113 = arith.addf %110, %112 : vector<1x32xf32>
    %114 = math.tanh %113 : vector<1x32xf32>
    %cst_34 = arith.constant 1.000000e+00 : f32
    %115 = vector.broadcast %cst_34 : f32 to vector<1x32xf32>
    %116 = arith.subf %115, %109 : vector<1x32xf32>
    %117 = arith.mulf %116, %114 : vector<1x32xf32>
    %118 = arith.mulf %109, %94 : vector<1x32xf32>
    %119 = arith.addf %117, %118 : vector<1x32xf32>
    %c8_i32_35 = arith.constant 8 : i32
    %120 = arith.muli %arg0, %c8_i32_35 : i32
    %c1_i32_36 = arith.constant 1 : i32
    %121 = arith.addi %120, %c1_i32_36 : i32
    %c12_i32_37 = arith.constant 12 : i32
    %122 = arith.cmpi slt, %121, %c12_i32_37 : i32
    %123 = arith.extui %122 : i1 to i32
    %124 = arith.sitofp %123 : i32 to f32
    %125 = vector.broadcast %124 : f32 to vector<1x32xf32>
    %126 = arith.mulf %125, %119 : vector<1x32xf32>
    %cst_38 = arith.constant 1.000000e+00 : f32
    %127 = arith.subf %cst_38, %124 : f32
    %128 = vector.broadcast %127 : f32 to vector<1x32xf32>
    %129 = arith.mulf %128, %94 : vector<1x32xf32>
    %130 = arith.addf %126, %129 : vector<1x32xf32>
    %cst_39 = arith.constant dense<0.000000e+00> : vector<1x128xf32>
    %131 = tpu.matmul %130, %58, %cst_39 {dimension_numbers = #tpu.dot_dimension_numbers<[1], [0], [0], [1], [0, 0, 1, 1], [], []>} : vector<1x32xf32>, vector<32x128xf32>, vector<1x128xf32> -> vector<1x128xf32>
    %132 = vector.extract_strided_slice %56 {offsets = [2, 0], sizes = [1, 128], strides = [1, 1]} : vector<8x128xf32> to vector<1x128xf32>
    %133 = arith.addf %131, %132 : vector<1x128xf32>
    %134 = vector.extract_strided_slice %133 {offsets = [0, 0], sizes = [1, 32], strides = [1, 1]} : vector<1x128xf32> to vector<1x32xf32>
    %135 = arith.negf %134 : vector<1x32xf32>
    %136 = math.exp %135 : vector<1x32xf32>
    %cst_40 = arith.constant 1.000000e+00 : f32
    %137 = vector.broadcast %cst_40 : f32 to vector<1x32xf32>
    %138 = arith.addf %137, %136 : vector<1x32xf32>
    %139 = arith.divf %137, %138 : vector<1x32xf32>
    %140 = vector.extract_strided_slice %133 {offsets = [0, 32], sizes = [1, 32], strides = [1, 1]} : vector<1x128xf32> to vector<1x32xf32>
    %141 = arith.negf %140 : vector<1x32xf32>
    %142 = math.exp %141 : vector<1x32xf32>
    %cst_41 = arith.constant 1.000000e+00 : f32
    %143 = vector.broadcast %cst_41 : f32 to vector<1x32xf32>
    %144 = arith.addf %143, %142 : vector<1x32xf32>
    %145 = arith.divf %143, %144 : vector<1x32xf32>
    %146 = vector.extract_strided_slice %133 {offsets = [0, 64], sizes = [1, 32], strides = [1, 1]} : vector<1x128xf32> to vector<1x32xf32>
    %147 = vector.extract_strided_slice %133 {offsets = [0, 96], sizes = [1, 32], strides = [1, 1]} : vector<1x128xf32> to vector<1x32xf32>
    %148 = arith.mulf %139, %147 : vector<1x32xf32>
    %149 = arith.addf %146, %148 : vector<1x32xf32>
    %150 = math.tanh %149 : vector<1x32xf32>
    %cst_42 = arith.constant 1.000000e+00 : f32
    %151 = vector.broadcast %cst_42 : f32 to vector<1x32xf32>
    %152 = arith.subf %151, %145 : vector<1x32xf32>
    %153 = arith.mulf %152, %150 : vector<1x32xf32>
    %154 = arith.mulf %145, %130 : vector<1x32xf32>
    %155 = arith.addf %153, %154 : vector<1x32xf32>
    %c8_i32_43 = arith.constant 8 : i32
    %156 = arith.muli %arg0, %c8_i32_43 : i32
    %c2_i32_44 = arith.constant 2 : i32
    %157 = arith.addi %156, %c2_i32_44 : i32
    %c12_i32_45 = arith.constant 12 : i32
    %158 = arith.cmpi slt, %157, %c12_i32_45 : i32
    %159 = arith.extui %158 : i1 to i32
    %160 = arith.sitofp %159 : i32 to f32
    %161 = vector.broadcast %160 : f32 to vector<1x32xf32>
    %162 = arith.mulf %161, %155 : vector<1x32xf32>
    %cst_46 = arith.constant 1.000000e+00 : f32
    %163 = arith.subf %cst_46, %160 : f32
    %164 = vector.broadcast %163 : f32 to vector<1x32xf32>
    %165 = arith.mulf %164, %130 : vector<1x32xf32>
    %166 = arith.addf %162, %165 : vector<1x32xf32>
    %cst_47 = arith.constant dense<0.000000e+00> : vector<1x128xf32>
    %167 = tpu.matmul %166, %58, %cst_47 {dimension_numbers = #tpu.dot_dimension_numbers<[1], [0], [0], [1], [0, 0, 1, 1], [], []>} : vector<1x32xf32>, vector<32x128xf32>, vector<1x128xf32> -> vector<1x128xf32>
    %168 = vector.extract_strided_slice %56 {offsets = [3, 0], sizes = [1, 128], strides = [1, 1]} : vector<8x128xf32> to vector<1x128xf32>
    %169 = arith.addf %167, %168 : vector<1x128xf32>
    %170 = vector.extract_strided_slice %169 {offsets = [0, 0], sizes = [1, 32], strides = [1, 1]} : vector<1x128xf32> to vector<1x32xf32>
    %171 = arith.negf %170 : vector<1x32xf32>
    %172 = math.exp %171 : vector<1x32xf32>
    %cst_48 = arith.constant 1.000000e+00 : f32
    %173 = vector.broadcast %cst_48 : f32 to vector<1x32xf32>
    %174 = arith.addf %173, %172 : vector<1x32xf32>
    %175 = arith.divf %173, %174 : vector<1x32xf32>
    %176 = vector.extract_strided_slice %169 {offsets = [0, 32], sizes = [1, 32], strides = [1, 1]} : vector<1x128xf32> to vector<1x32xf32>
    %177 = arith.negf %176 : vector<1x32xf32>
    %178 = math.exp %177 : vector<1x32xf32>
    %cst_49 = arith.constant 1.000000e+00 : f32
    %179 = vector.broadcast %cst_49 : f32 to vector<1x32xf32>
    %180 = arith.addf %179, %178 : vector<1x32xf32>
    %181 = arith.divf %179, %180 : vector<1x32xf32>
    %182 = vector.extract_strided_slice %169 {offsets = [0, 64], sizes = [1, 32], strides = [1, 1]} : vector<1x128xf32> to vector<1x32xf32>
    %183 = vector.extract_strided_slice %169 {offsets = [0, 96], sizes = [1, 32], strides = [1, 1]} : vector<1x128xf32> to vector<1x32xf32>
    %184 = arith.mulf %175, %183 : vector<1x32xf32>
    %185 = arith.addf %182, %184 : vector<1x32xf32>
    %186 = math.tanh %185 : vector<1x32xf32>
    %cst_50 = arith.constant 1.000000e+00 : f32
    %187 = vector.broadcast %cst_50 : f32 to vector<1x32xf32>
    %188 = arith.subf %187, %181 : vector<1x32xf32>
    %189 = arith.mulf %188, %186 : vector<1x32xf32>
    %190 = arith.mulf %181, %166 : vector<1x32xf32>
    %191 = arith.addf %189, %190 : vector<1x32xf32>
    %c8_i32_51 = arith.constant 8 : i32
    %192 = arith.muli %arg0, %c8_i32_51 : i32
    %c3_i32_52 = arith.constant 3 : i32
    %193 = arith.addi %192, %c3_i32_52 : i32
    %c12_i32_53 = arith.constant 12 : i32
    %194 = arith.cmpi slt, %193, %c12_i32_53 : i32
    %195 = arith.extui %194 : i1 to i32
    %196 = arith.sitofp %195 : i32 to f32
    %197 = vector.broadcast %196 : f32 to vector<1x32xf32>
    %198 = arith.mulf %197, %191 : vector<1x32xf32>
    %cst_54 = arith.constant 1.000000e+00 : f32
    %199 = arith.subf %cst_54, %196 : f32
    %200 = vector.broadcast %199 : f32 to vector<1x32xf32>
    %201 = arith.mulf %200, %166 : vector<1x32xf32>
    %202 = arith.addf %198, %201 : vector<1x32xf32>
    %cst_55 = arith.constant dense<0.000000e+00> : vector<1x128xf32>
    %203 = tpu.matmul %202, %58, %cst_55 {dimension_numbers = #tpu.dot_dimension_numbers<[1], [0], [0], [1], [0, 0, 1, 1], [], []>} : vector<1x32xf32>, vector<32x128xf32>, vector<1x128xf32> -> vector<1x128xf32>
    %204 = vector.extract_strided_slice %56 {offsets = [4, 0], sizes = [1, 128], strides = [1, 1]} : vector<8x128xf32> to vector<1x128xf32>
    %205 = arith.addf %203, %204 : vector<1x128xf32>
    %206 = vector.extract_strided_slice %205 {offsets = [0, 0], sizes = [1, 32], strides = [1, 1]} : vector<1x128xf32> to vector<1x32xf32>
    %207 = arith.negf %206 : vector<1x32xf32>
    %208 = math.exp %207 : vector<1x32xf32>
    %cst_56 = arith.constant 1.000000e+00 : f32
    %209 = vector.broadcast %cst_56 : f32 to vector<1x32xf32>
    %210 = arith.addf %209, %208 : vector<1x32xf32>
    %211 = arith.divf %209, %210 : vector<1x32xf32>
    %212 = vector.extract_strided_slice %205 {offsets = [0, 32], sizes = [1, 32], strides = [1, 1]} : vector<1x128xf32> to vector<1x32xf32>
    %213 = arith.negf %212 : vector<1x32xf32>
    %214 = math.exp %213 : vector<1x32xf32>
    %cst_57 = arith.constant 1.000000e+00 : f32
    %215 = vector.broadcast %cst_57 : f32 to vector<1x32xf32>
    %216 = arith.addf %215, %214 : vector<1x32xf32>
    %217 = arith.divf %215, %216 : vector<1x32xf32>
    %218 = vector.extract_strided_slice %205 {offsets = [0, 64], sizes = [1, 32], strides = [1, 1]} : vector<1x128xf32> to vector<1x32xf32>
    %219 = vector.extract_strided_slice %205 {offsets = [0, 96], sizes = [1, 32], strides = [1, 1]} : vector<1x128xf32> to vector<1x32xf32>
    %220 = arith.mulf %211, %219 : vector<1x32xf32>
    %221 = arith.addf %218, %220 : vector<1x32xf32>
    %222 = math.tanh %221 : vector<1x32xf32>
    %cst_58 = arith.constant 1.000000e+00 : f32
    %223 = vector.broadcast %cst_58 : f32 to vector<1x32xf32>
    %224 = arith.subf %223, %217 : vector<1x32xf32>
    %225 = arith.mulf %224, %222 : vector<1x32xf32>
    %226 = arith.mulf %217, %202 : vector<1x32xf32>
    %227 = arith.addf %225, %226 : vector<1x32xf32>
    %c8_i32_59 = arith.constant 8 : i32
    %228 = arith.muli %arg0, %c8_i32_59 : i32
    %c4_i32_60 = arith.constant 4 : i32
    %229 = arith.addi %228, %c4_i32_60 : i32
    %c12_i32_61 = arith.constant 12 : i32
    %230 = arith.cmpi slt, %229, %c12_i32_61 : i32
    %231 = arith.extui %230 : i1 to i32
    %232 = arith.sitofp %231 : i32 to f32
    %233 = vector.broadcast %232 : f32 to vector<1x32xf32>
    %234 = arith.mulf %233, %227 : vector<1x32xf32>
    %cst_62 = arith.constant 1.000000e+00 : f32
    %235 = arith.subf %cst_62, %232 : f32
    %236 = vector.broadcast %235 : f32 to vector<1x32xf32>
    %237 = arith.mulf %236, %202 : vector<1x32xf32>
    %238 = arith.addf %234, %237 : vector<1x32xf32>
    %cst_63 = arith.constant dense<0.000000e+00> : vector<1x128xf32>
    %239 = tpu.matmul %238, %58, %cst_63 {dimension_numbers = #tpu.dot_dimension_numbers<[1], [0], [0], [1], [0, 0, 1, 1], [], []>} : vector<1x32xf32>, vector<32x128xf32>, vector<1x128xf32> -> vector<1x128xf32>
    %240 = vector.extract_strided_slice %56 {offsets = [5, 0], sizes = [1, 128], strides = [1, 1]} : vector<8x128xf32> to vector<1x128xf32>
    %241 = arith.addf %239, %240 : vector<1x128xf32>
    %242 = vector.extract_strided_slice %241 {offsets = [0, 0], sizes = [1, 32], strides = [1, 1]} : vector<1x128xf32> to vector<1x32xf32>
    %243 = arith.negf %242 : vector<1x32xf32>
    %244 = math.exp %243 : vector<1x32xf32>
    %cst_64 = arith.constant 1.000000e+00 : f32
    %245 = vector.broadcast %cst_64 : f32 to vector<1x32xf32>
    %246 = arith.addf %245, %244 : vector<1x32xf32>
    %247 = arith.divf %245, %246 : vector<1x32xf32>
    %248 = vector.extract_strided_slice %241 {offsets = [0, 32], sizes = [1, 32], strides = [1, 1]} : vector<1x128xf32> to vector<1x32xf32>
    %249 = arith.negf %248 : vector<1x32xf32>
    %250 = math.exp %249 : vector<1x32xf32>
    %cst_65 = arith.constant 1.000000e+00 : f32
    %251 = vector.broadcast %cst_65 : f32 to vector<1x32xf32>
    %252 = arith.addf %251, %250 : vector<1x32xf32>
    %253 = arith.divf %251, %252 : vector<1x32xf32>
    %254 = vector.extract_strided_slice %241 {offsets = [0, 64], sizes = [1, 32], strides = [1, 1]} : vector<1x128xf32> to vector<1x32xf32>
    %255 = vector.extract_strided_slice %241 {offsets = [0, 96], sizes = [1, 32], strides = [1, 1]} : vector<1x128xf32> to vector<1x32xf32>
    %256 = arith.mulf %247, %255 : vector<1x32xf32>
    %257 = arith.addf %254, %256 : vector<1x32xf32>
    %258 = math.tanh %257 : vector<1x32xf32>
    %cst_66 = arith.constant 1.000000e+00 : f32
    %259 = vector.broadcast %cst_66 : f32 to vector<1x32xf32>
    %260 = arith.subf %259, %253 : vector<1x32xf32>
    %261 = arith.mulf %260, %258 : vector<1x32xf32>
    %262 = arith.mulf %253, %238 : vector<1x32xf32>
    %263 = arith.addf %261, %262 : vector<1x32xf32>
    %c8_i32_67 = arith.constant 8 : i32
    %264 = arith.muli %arg0, %c8_i32_67 : i32
    %c5_i32_68 = arith.constant 5 : i32
    %265 = arith.addi %264, %c5_i32_68 : i32
    %c12_i32_69 = arith.constant 12 : i32
    %266 = arith.cmpi slt, %265, %c12_i32_69 : i32
    %267 = arith.extui %266 : i1 to i32
    %268 = arith.sitofp %267 : i32 to f32
    %269 = vector.broadcast %268 : f32 to vector<1x32xf32>
    %270 = arith.mulf %269, %263 : vector<1x32xf32>
    %cst_70 = arith.constant 1.000000e+00 : f32
    %271 = arith.subf %cst_70, %268 : f32
    %272 = vector.broadcast %271 : f32 to vector<1x32xf32>
    %273 = arith.mulf %272, %238 : vector<1x32xf32>
    %274 = arith.addf %270, %273 : vector<1x32xf32>
    %cst_71 = arith.constant dense<0.000000e+00> : vector<1x128xf32>
    %275 = tpu.matmul %274, %58, %cst_71 {dimension_numbers = #tpu.dot_dimension_numbers<[1], [0], [0], [1], [0, 0, 1, 1], [], []>} : vector<1x32xf32>, vector<32x128xf32>, vector<1x128xf32> -> vector<1x128xf32>
    %276 = vector.extract_strided_slice %56 {offsets = [6, 0], sizes = [1, 128], strides = [1, 1]} : vector<8x128xf32> to vector<1x128xf32>
    %277 = arith.addf %275, %276 : vector<1x128xf32>
    %278 = vector.extract_strided_slice %277 {offsets = [0, 0], sizes = [1, 32], strides = [1, 1]} : vector<1x128xf32> to vector<1x32xf32>
    %279 = arith.negf %278 : vector<1x32xf32>
    %280 = math.exp %279 : vector<1x32xf32>
    %cst_72 = arith.constant 1.000000e+00 : f32
    %281 = vector.broadcast %cst_72 : f32 to vector<1x32xf32>
    %282 = arith.addf %281, %280 : vector<1x32xf32>
    %283 = arith.divf %281, %282 : vector<1x32xf32>
    %284 = vector.extract_strided_slice %277 {offsets = [0, 32], sizes = [1, 32], strides = [1, 1]} : vector<1x128xf32> to vector<1x32xf32>
    %285 = arith.negf %284 : vector<1x32xf32>
    %286 = math.exp %285 : vector<1x32xf32>
    %cst_73 = arith.constant 1.000000e+00 : f32
    %287 = vector.broadcast %cst_73 : f32 to vector<1x32xf32>
    %288 = arith.addf %287, %286 : vector<1x32xf32>
    %289 = arith.divf %287, %288 : vector<1x32xf32>
    %290 = vector.extract_strided_slice %277 {offsets = [0, 64], sizes = [1, 32], strides = [1, 1]} : vector<1x128xf32> to vector<1x32xf32>
    %291 = vector.extract_strided_slice %277 {offsets = [0, 96], sizes = [1, 32], strides = [1, 1]} : vector<1x128xf32> to vector<1x32xf32>
    %292 = arith.mulf %283, %291 : vector<1x32xf32>
    %293 = arith.addf %290, %292 : vector<1x32xf32>
    %294 = math.tanh %293 : vector<1x32xf32>
    %cst_74 = arith.constant 1.000000e+00 : f32
    %295 = vector.broadcast %cst_74 : f32 to vector<1x32xf32>
    %296 = arith.subf %295, %289 : vector<1x32xf32>
    %297 = arith.mulf %296, %294 : vector<1x32xf32>
    %298 = arith.mulf %289, %274 : vector<1x32xf32>
    %299 = arith.addf %297, %298 : vector<1x32xf32>
    %c8_i32_75 = arith.constant 8 : i32
    %300 = arith.muli %arg0, %c8_i32_75 : i32
    %c6_i32_76 = arith.constant 6 : i32
    %301 = arith.addi %300, %c6_i32_76 : i32
    %c12_i32_77 = arith.constant 12 : i32
    %302 = arith.cmpi slt, %301, %c12_i32_77 : i32
    %303 = arith.extui %302 : i1 to i32
    %304 = arith.sitofp %303 : i32 to f32
    %305 = vector.broadcast %304 : f32 to vector<1x32xf32>
    %306 = arith.mulf %305, %299 : vector<1x32xf32>
    %cst_78 = arith.constant 1.000000e+00 : f32
    %307 = arith.subf %cst_78, %304 : f32
    %308 = vector.broadcast %307 : f32 to vector<1x32xf32>
    %309 = arith.mulf %308, %274 : vector<1x32xf32>
    %310 = arith.addf %306, %309 : vector<1x32xf32>
    %cst_79 = arith.constant dense<0.000000e+00> : vector<1x128xf32>
    %311 = tpu.matmul %310, %58, %cst_79 {dimension_numbers = #tpu.dot_dimension_numbers<[1], [0], [0], [1], [0, 0, 1, 1], [], []>} : vector<1x32xf32>, vector<32x128xf32>, vector<1x128xf32> -> vector<1x128xf32>
    %312 = vector.extract_strided_slice %56 {offsets = [7, 0], sizes = [1, 128], strides = [1, 1]} : vector<8x128xf32> to vector<1x128xf32>
    %313 = arith.addf %311, %312 : vector<1x128xf32>
    %314 = vector.extract_strided_slice %313 {offsets = [0, 0], sizes = [1, 32], strides = [1, 1]} : vector<1x128xf32> to vector<1x32xf32>
    %315 = arith.negf %314 : vector<1x32xf32>
    %316 = math.exp %315 : vector<1x32xf32>
    %cst_80 = arith.constant 1.000000e+00 : f32
    %317 = vector.broadcast %cst_80 : f32 to vector<1x32xf32>
    %318 = arith.addf %317, %316 : vector<1x32xf32>
    %319 = arith.divf %317, %318 : vector<1x32xf32>
    %320 = vector.extract_strided_slice %313 {offsets = [0, 32], sizes = [1, 32], strides = [1, 1]} : vector<1x128xf32> to vector<1x32xf32>
    %321 = arith.negf %320 : vector<1x32xf32>
    %322 = math.exp %321 : vector<1x32xf32>
    %cst_81 = arith.constant 1.000000e+00 : f32
    %323 = vector.broadcast %cst_81 : f32 to vector<1x32xf32>
    %324 = arith.addf %323, %322 : vector<1x32xf32>
    %325 = arith.divf %323, %324 : vector<1x32xf32>
    %326 = vector.extract_strided_slice %313 {offsets = [0, 64], sizes = [1, 32], strides = [1, 1]} : vector<1x128xf32> to vector<1x32xf32>
    %327 = vector.extract_strided_slice %313 {offsets = [0, 96], sizes = [1, 32], strides = [1, 1]} : vector<1x128xf32> to vector<1x32xf32>
    %328 = arith.mulf %319, %327 : vector<1x32xf32>
    %329 = arith.addf %326, %328 : vector<1x32xf32>
    %330 = math.tanh %329 : vector<1x32xf32>
    %cst_82 = arith.constant 1.000000e+00 : f32
    %331 = vector.broadcast %cst_82 : f32 to vector<1x32xf32>
    %332 = arith.subf %331, %325 : vector<1x32xf32>
    %333 = arith.mulf %332, %330 : vector<1x32xf32>
    %334 = arith.mulf %325, %310 : vector<1x32xf32>
    %335 = arith.addf %333, %334 : vector<1x32xf32>
    %c8_i32_83 = arith.constant 8 : i32
    %336 = arith.muli %arg0, %c8_i32_83 : i32
    %c7_i32_84 = arith.constant 7 : i32
    %337 = arith.addi %336, %c7_i32_84 : i32
    %c12_i32_85 = arith.constant 12 : i32
    %338 = arith.cmpi slt, %337, %c12_i32_85 : i32
    %339 = arith.extui %338 : i1 to i32
    %340 = arith.sitofp %339 : i32 to f32
    %341 = vector.broadcast %340 : f32 to vector<1x32xf32>
    %342 = arith.mulf %341, %335 : vector<1x32xf32>
    %cst_86 = arith.constant 1.000000e+00 : f32
    %343 = arith.subf %cst_86, %340 : f32
    %344 = vector.broadcast %343 : f32 to vector<1x32xf32>
    %345 = arith.mulf %344, %310 : vector<1x32xf32>
    %346 = arith.addf %342, %345 : vector<1x32xf32>
    %c0_87 = arith.constant 0 : index
    %c0_88 = arith.constant 0 : index
    %347 = vector.load %arg10[%c0_87, %c0_88] : memref<1x32xf32, #tpu.memory_space<vmem>>, vector<1x32xf32>
    tpu.vector_store %arg10[%c0_87, %c0_88], %346 {strides = array<i32>} : memref<1x32xf32, #tpu.memory_space<vmem>>, vector<1x32xf32>,
    %348 = tpu.concatenate %94, %130, %166, %202, %238, %274, %310, %346 in 0 : vector<1x32xf32>, vector<1x32xf32>, vector<1x32xf32>, vector<1x32xf32>, vector<1x32xf32>, vector<1x32xf32>, vector<1x32xf32>, vector<1x32xf32> -> vector<8x32xf32>
    %c0_89 = arith.constant 0 : index
    %c0_90 = arith.constant 0 : index
    %349 = vector.load %arg6[%c0_89, %c0_90] : memref<32x128xf32, #tpu.memory_space<vmem>>, vector<32x128xf32>
    %cst_91 = arith.constant dense<0.000000e+00> : vector<8x128xf32>
    %350 = tpu.matmul %348, %349, %cst_91 {dimension_numbers = #tpu.dot_dimension_numbers<[1], [0], [0], [1], [0, 0, 1, 1], [], []>} : vector<8x32xf32>, vector<32x128xf32>, vector<8x128xf32> -> vector<8x128xf32>
    %c0_92 = arith.constant 0 : index
    %c0_93 = arith.constant 0 : index
    %351 = vector.load %arg7[%c0_92, %c0_93] : memref<1x128xf32, #tpu.memory_space<vmem>>, vector<1x128xf32>
    %352 = vector.broadcast %351 : vector<1x128xf32> to vector<8x128xf32>
    %353 = arith.addf %350, %352 : vector<8x128xf32>
    %cst_94 = arith.constant dense<0xFF800000> : vector<8xf32>
    %354 = vector.multi_reduction <maximumf>, %353, %cst_94 [1] : vector<8x128xf32> to vector<8xf32>
    %355 = vector.shape_cast %354 : vector<8xf32> to vector<8x1xf32>
    %356 = vector.broadcast %355 : vector<8x1xf32> to vector<8x128xf32>
    %357 = arith.subf %353, %356 : vector<8x128xf32>
    %358 = math.exp %357 : vector<8x128xf32>
    %cst_95 = arith.constant dense<0.000000e+00> : vector<8xf32>
    %359 = vector.multi_reduction <add>, %358, %cst_95 [1] : vector<8x128xf32> to vector<8xf32>
    %360 = vector.shape_cast %359 : vector<8xf32> to vector<8x1xf32>
    %361 = math.log %360 : vector<8x1xf32>
    %362 = vector.broadcast %361 : vector<8x1xf32> to vector<8x128xf32>
    %363 = arith.subf %357, %362 : vector<8x128xf32>
    %c0_96 = arith.constant 0 : index
    %c0_97 = arith.constant 0 : index
    %364 = vector.load %arg9[%c0_96, %c0_97] : memref<8x128xf32, #tpu.memory_space<vmem>>, vector<8x128xf32>
    tpu.vector_store %arg9[%c0_96, %c0_97], %363 {strides = array<i32>} : memref<8x128xf32, #tpu.memory_space<vmem>>, vector<8x128xf32>,
    return
  }
  func.func @transform_0(%arg0: i32, %arg1: memref<16xi32, #tpu.memory_space<smem>>) -> (i32, i32) {
    %c0_i32 = arith.constant 0 : i32
    %c0_i32_0 = arith.constant 0 : i32
    %c0_i32_1 = arith.constant 0 : i32
    return %c0_i32, %c0_i32_0 : i32, i32
  }
  func.func @transform_1(%arg0: i32, %arg1: memref<16xi32, #tpu.memory_space<smem>>) -> (i32, i32) {
    %c0_i32 = arith.constant 0 : i32
    %c0_i32_0 = arith.constant 0 : i32
    %c0_i32_1 = arith.constant 0 : i32
    return %c0_i32, %c0_i32_0 : i32, i32
  }
  func.func @transform_2(%arg0: i32, %arg1: memref<16xi32, #tpu.memory_space<smem>>) -> (i32, i32) {
    %c0_i32 = arith.constant 0 : i32
    %c0_i32_0 = arith.constant 0 : i32
    %c0_i32_1 = arith.constant 0 : i32
    return %c0_i32, %c0_i32_0 : i32, i32
  }
  func.func @transform_3(%arg0: i32, %arg1: memref<16xi32, #tpu.memory_space<smem>>) -> (i32, i32) {
    %c0_i32 = arith.constant 0 : i32
    %c0_i32_0 = arith.constant 0 : i32
    %c0_i32_1 = arith.constant 0 : i32
    return %c0_i32, %c0_i32_0 : i32, i32
  }
  func.func @transform_4(%arg0: i32, %arg1: memref<16xi32, #tpu.memory_space<smem>>) -> (i32, i32) {
    %c0_i32 = arith.constant 0 : i32
    %c0_i32_0 = arith.constant 0 : i32
    %c0_i32_1 = arith.constant 0 : i32
    return %c0_i32, %c0_i32_0 : i32, i32
  }
  func.func @transform_5(%arg0: i32, %arg1: memref<16xi32, #tpu.memory_space<smem>>) -> (i32, i32) {
    %c0_i32 = arith.constant 0 : i32
    %c0_i32_0 = arith.constant 0 : i32
    %c0_i32_1 = arith.constant 0 : i32
    return %c0_i32, %c0_i32_0 : i32, i32
  }
  func.func @transform_6(%arg0: i32, %arg1: memref<16xi32, #tpu.memory_space<smem>>) -> (i32, i32) {
    %c0_i32 = arith.constant 0 : i32
    %c0_i32_0 = arith.constant 0 : i32
    %c0_i32_1 = arith.constant 0 : i32
    return %c0_i32, %c0_i32_0 : i32, i32
  }
  func.func @transform_7(%arg0: i32, %arg1: memref<16xi32, #tpu.memory_space<smem>>) -> (i32, i32) {
    %c0_i32 = arith.constant 0 : i32
    %c0_i32_0 = arith.constant 0 : i32
    return %arg0, %c0_i32 : i32, i32
  }
  func.func @transform_8(%arg0: i32, %arg1: memref<16xi32, #tpu.memory_space<smem>>) -> (i32, i32) {
    %c0_i32 = arith.constant 0 : i32
    %c0_i32_0 = arith.constant 0 : i32
    %c0_i32_1 = arith.constant 0 : i32
    return %c0_i32, %c0_i32_0 : i32, i32
  }
}

</mosaic_0001>

<bundles_post_ra>
// kernel: tpu_custom_call.1
= control target key start
LH: loop header
LB: loop body
LE: loop exit
PB: predicated region body
PF: predicated region fallthrough
CT: control target
= control target key end

     0   :  { %s2959_s0 = inlined_call_operand.hbm [shape: s32[16], index: 0, kind: input, shape index: {}]   ;;  %s2960_s1 = inlined_call_operand.hbm [shape: f32[40,128], index: 1, kind: input, shape index: {}]   ;;  %s2961_s2 = inlined_call_operand.hbm [shape: f32[128,128], index: 2, kind: input, shape index: {}]   ;;  %s2962_s3 = inlined_call_operand.hbm [shape: f32[32,128], index: 3, kind: input, shape index: {}]   ;;  %s2963_s4 = inlined_call_operand.vmem [shape: f32[1,128], index: 4, kind: input, shape index: {}]   ;;  %s2964_s5 = inlined_call_operand.hbm [shape: f32[32,128], index: 5, kind: input, shape index: {}]   ;;  %s2965_s6 = inlined_call_operand.vmem [shape: f32[1,128], index: 6, kind: input, shape index: {}]   ;;  %s2966_s7 = inlined_call_operand.vmem [shape: f32[1,32], index: 7, kind: input, shape index: {}]   ;;  %s2967_s8 = inlined_call_operand.hbm [shape: f32[16,128], index: 8, kind: output, shape index: {0}]   ;;  %s2968_s9 = inlined_call_operand.hbm [shape: f32[1,32], index: 9, kind: output, shape index: {1}]  }
   0x1   :  { %s2137_s11 = scalar_lea.hbm %s2959_s0, 16 }
   0x2   :  { %p2138_p0 = scmp.ne.s32.totalorder %s2959_s0, %s2137_s11  ;;  %p2141_p1 = scmp.lt.u32.totalorder %s2137_s11, %s2959_s0 }
   0x4   :  { %p2143_p2 = pnand %p2141_p1, %p2138_p0 }
   0x6   :  { %2146 = shalt.err (!%p2143_p2)  }
   0x7   :  { %s2367_s16 = smov [#allocation3]  }
   0x8   :  { %16 = dma.hbm_to_smem %s2959_s0, 16, %s2367_s16, [#allocation2] }
   0x9   :  { %2329 = dma.done.wait [#allocation2], 16 }
   0xa   :  { %2330 = vsyncadd [#allocation2], 4294967280 }
   0xb   :  { %18 = sfence }
   0xc   :  { %19 = vsyncpa [#allocation5], 0 }
   0xd   :  { %20 = vsyncpa [#allocation8], 0 }
   0xe   :  { %21 = vsyncpa [#allocation11], 0 }
   0xf   :  { %22 = vsyncpa [#allocation6], 0 }
  0x10   :  { %24 = vsyncpa [#allocation6 + $0x1], 0 }
  0x11   :  { %25 = vsyncpa [#allocation14], 0  ;;  %s2444_s19 = smov 0   ;;  %s2446_s20 = smov 0  }
  0x12   :  { %s2448_s21 = smov 0   ;;  %s2450_s22 = smov 0  }
  0x13 LB: > { %2981 = sst [smem:[#allocation21_spill]] %s2361_s21  ;;  %s2465_s0 = sadd.s32 4294967295, %s2365_s22   ;;  %s2365_s22 = sphi %s2450_s22, %s3012_s22   ;;  %s2361_s21 = sphi %s2448_s21, %s3014_s21   ;;  %s2357_s20 = sphi %s2446_s20, %s3016_s20   ;;  %s2353_s19 = sphi %s2444_s19, %s3015_s19  }
  0x14   : > { %s1676_s23 = sadd.s32 4294967294, %s2365_s22   ;;  %s2469_s24 = sadd.s32 1, %s2365_s22  }
  0x15   : > { %2982 = sst [smem:[#allocation22_spill]] %s2469_s24  ;;  %s185_s25 = sadd.s32 1, %s2361_s21 }
  0x16   : > { %s182_s26 = ssub.s32 %s2365_s22, %s2469_s24  ;;  %p195_p3 = scmp.ne.s32.totalorder %s2361_s21, %s2357_s20 }
  0x17   : > { %p183_p4 = scmp.eq.s32.totalorder %s182_s26, 0  ;;  %p2969_p5 = scmp.eq.s32.totalorder %s2465_s0, 1 }
  0x18   : > { %p201_p6 = scmp.ne.s32.totalorder %s2357_s20, %s2353_s19  ;;  %p202_p7 = scmp.eq.s32.totalorder %s1676_s23, 1 }
  0x19   : > { %s2480_s27 = scalar_select %p183_p4, %s2361_s21, %s185_s25  }
  0x1a   : > { %p2484_p8 = por %p2969_p5, %p195_p3  ;;  %p2488_p9 = por %p202_p7, %p201_p6 }
  0x1b   : > { %2983 = sst [smem:[#allocation23_spill]] %s2480_s27  ;;  %p1677_p10 = scmp.ge.s32.totalorder %s2365_s22, 1 }
  0x1c   : > { %s2984_s28 = scalar_select %p2484_p8, 1, 0 }
  0x1d   : > { %s2985_s29 = scalar_select %p2488_p9, 1, 0 }
  0x1e   : > { %p230_p11 = scmp.lt.s32.totalorder %s2365_s22, 3  ;;  %p2970_p13 = scmp.eq.s32.totalorder %s2465_s0, 0 }
  0x1f   : > { %2986 = sst [smem:[#allocation24_spill]] %s2985_s29  ;;  %s2368_s10 = smov [#allocation7]  }
  0x20   : > { %p2496_p0 = pnand %p1677_p10, %p230_p11  ;;  %s255_s11 = sshll.u32 %s2368_s10, 4  ;;  %s2502_s11 = int_to_ptr.vmem [resolvable:$true] %s255_s11 }
  0x21   : > { %s2369_s13 = smov [#allocation4]   ;;  %s2370_s15 = smov [#allocation9]  }
  0x22   : > { %s2987_s30 = scalar_select %p2496_p0, 1, 0 }
  0x23   : > { %p2011_p1 = pneg %p2496_p0  ;;  %s242_s14 = sshll.u32 %s2369_s13, 4  ;;  %s2510_s14 = int_to_ptr.vmem [resolvable:$true] %s242_s14 }
  0x24   : > { %s2512_s16 = sshll.u32 %s2370_s15, 4  ;;  %s2147_s23 = scalar_lea.hbm %s2961_s2, 2048  ;;  %s269_s16 = int_to_ptr.vmem [resolvable:$true] %s2512_s16 }
  0x25   : > { %p2506_p2 = pnand %p2970_p13, %p2011_p1  ;;  %p2148_p3 = scmp.ne.s32.totalorder %s2961_s2, %s2147_s23 }
  0x26   : > { %p2154_p10 = scmp.lt.u32.totalorder %s2147_s23, %s2961_s2 }
  0x27   : > { %p2522_p4 = pneg %p2506_p2 }
  0x29   : > { %p2150_p6 = pnand %p2522_p4, %p2148_p3 }
  0x2b   : > { %p2151_p7 = pneg %p2150_p6 }
  0x2d   : > { %p2156_p11 = pnand %p2154_p10, %p2151_p7 }
  0x2f   : > { %2159 = shalt.err (!%p2156_p11)
}
  0x30   : > { %s2160_s17 = scalar_lea.vmem %s2502_s11, 2048  ;;  %p2168_p13 = scmp.lt.s32.totalorder %s2502_s11, %s2502_s11 }
  0x31   : > { %p2161_p1 = scmp.ne.s32.totalorder %s2502_s11, %s2160_s17  ;;  %p2169_p9 = scmp.lt.s32.totalorder %s2160_s17, %s2160_s17 }
  0x33   : > { %p2163_p5 = pnand %p2161_p1, %p2522_p4  ;;  %p2170_p3 = por %p2169_p9, %p2168_p13 }
  0x35   : > { %p2164_p12 = pneg %p2163_p5 }
  0x37   : > { %p2171_p6 = pnand %p2170_p3, %p2164_p12 }
  0x39   : > { %2174 = shalt.err (!%p2171_p6)
}
  0x3a   : > { %s2371_s18 = smov 128   ;;  %s2372_s23 = smov 8  }
  0x3b   : > { %2017 = dma.hbm_to_vmem [thread:$0]  (!%p2506_p2), %s2961_s2, 2048, %s2502_s11, [#allocation8], %s2371_s18, %s2371_s18, %s2372_s23  }
  0x3c   : > { %s2175_s17 = scalar_lea.hbm %s2960_s1, 640 }
  0x3d   : > { %p2176_p5 = scmp.ne.s32.totalorder %s2960_s1, %s2175_s17  ;;  %p2182_p13 = scmp.lt.u32.totalorder %s2175_s17, %s2960_s1 }
  0x3f   : > { %p2178_p9 = pnand %p2176_p5, %p2522_p4 }
  0x41   : > { %p2179_p12 = pneg %p2178_p9 }
  0x43   : > { %p2184_p7 = pnand %p2182_p13, %p2179_p12 }
  0x45   : > { %2187 = shalt.err (!%p2184_p7)
}
  0x46   : > { %s2188_s11 = scalar_lea.vmem %s2510_s14, 640  ;;  %p2196_p3 = scmp.lt.s32.totalorder %s2510_s14, %s2510_s14 }
  0x47   : > { %p2189_p10 = scmp.ne.s32.totalorder %s2510_s14, %s2188_s11  ;;  %p2197_p6 = scmp.lt.s32.totalorder %s2188_s11, %s2188_s11 }
  0x49   : > { %p2191_p11 = pnand %p2189_p10, %p2522_p4  ;;  %p2198_p5 = por %p2197_p6, %p2196_p3 }
  0x4b   : > { %p2192_p1 = pneg %p2191_p11 }
  0x4d   : > { %p2199_p9 = pnand %p2198_p5, %p2192_p1 }
  0x4f   : > { %2202 = shalt.err (!%p2199_p9)
}
  0x50   : > { %2014 = dma.hbm_to_vmem [thread:$0]  (!%p2506_p2), %s2960_s1, 640, %s2510_s14, [#allocation5], %s2371_s18, %s2371_s18, %s2372_s23  }
  0x51   : > { %s2203_s25 = scalar_lea.hbm %s2962_s3, 512 }
  0x52   : > { %p2204_p12 = scmp.ne.s32.totalorder %s2962_s3, %s2203_s25  ;;  %p2210_p10 = scmp.lt.u32.totalorder %s2203_s25, %s2962_s3 }
  0x54   : > { %p2206_p13 = pnand %p2204_p12, %p2522_p4 }
  0x56   : > { %p2207_p7 = pneg %p2206_p13 }
  0x58   : > { %p2212_p11 = pnand %p2210_p10, %p2207_p7 }
  0x5a   : > { %2215 = shalt.err (!%p2212_p11)
}
  0x5b   : > { %s2216_s11 = scalar_lea.vmem %s269_s16, 512  ;;  %p2224_p5 = scmp.lt.s32.totalorder %s269_s16, %s269_s16 }
  0x5c   : > { %p2217_p1 = scmp.ne.s32.totalorder %s269_s16, %s2216_s11  ;;  %p2225_p9 = scmp.lt.s32.totalorder %s2216_s11, %s2216_s11 }
  0x5e   : > { %p2219_p3 = pnand %p2217_p1, %p2522_p4  ;;  %p2226_p8 = por %p2225_p9, %p2224_p5 }
  0x60   : > { %p2220_p6 = pneg %p2219_p3 }
  0x62   : > { %p2227_p0 = pnand %p2226_p8, %p2220_p6 }
  0x64   : > { %2230 = shalt.err (!%p2227_p0)
}
  0x65   : > { %2020 = dma.hbm_to_vmem [thread:$0]  (!%p2506_p2), %s2962_s3, 512, %s269_s16, [#allocation8], %s2371_s18, %s2371_s18, %s2372_s23  }
  0x66   : > { %s2373_s24 = smov [#allocation10]   ;;  %s2231_s26 = scalar_lea.hbm %s2964_s5, 512 }
  0x67   : > { %s284_s27 = sshll.u32 %s2373_s24, 4  ;;  %p2232_p8 = scmp.ne.s32.totalorder %s2964_s5, %s2231_s26  ;;  %s285_s27 = int_to_ptr.vmem [resolvable:$true] %s284_s27 }
  0x68   : > { %p2238_p13 = scmp.lt.u32.totalorder %s2231_s26, %s2964_s5 }
  0x69   : > { %p2234_p0 = pnand %p2232_p8, %p2522_p4 }
  0x6b   : > { %p2235_p12 = pneg %p2234_p0 }
  0x6d   : > { %p2240_p7 = pnand %p2238_p13, %p2235_p12 }
  0x6f   : > { %2243 = shalt.err (!%p2240_p7)
}
  0x70   : > { %s2244_s16 = scalar_lea.vmem %s285_s27, 512  ;;  %p2252_p3 = scmp.lt.s32.totalorder %s285_s27, %s285_s27 }
  0x71   : > { %p2245_p10 = scmp.ne.s32.totalorder %s285_s27, %s2244_s16  ;;  %p2253_p6 = scmp.lt.s32.totalorder %s2244_s16, %s2244_s16 }
  0x73   : > { %p2247_p11 = pnand %p2245_p10, %p2522_p4  ;;  %p2254_p5 = por %p2253_p6, %p2252_p3 }
  0x75   : > { %p2248_p1 = pneg %p2247_p11 }
  0x77   : > { %p2255_p9 = pnand %p2254_p5, %p2248_p1 }
  0x79   : > { %2258 = shalt.err (!%p2255_p9)
}
  0x7a   : > { %2023 = dma.hbm_to_vmem [thread:$0]  (!%p2506_p2), %s2964_s5, 512, %s285_s27, [#allocation11], %s2371_s18, %s2371_s18, %s2372_s23  }
  0x7b   : > { %p2990_p8 = scmp.ne.s32.totalorder %s2987_s30, 0 }
  0x7c   : > { %p2991_p4 = scmp.eq.s32.totalorder (!%p2990_p8), %s2465_s0, 0 }
  0x7d   : > { %306 = sbr.rel (%p2990_p8) target bundleno = 6315 (0x18ab), region = 48 }
  0x84   : > { %2332 = dma.done.wait (%p2991_p4), [#allocation5], 640   ;;  %p2992_p0 = pmov %p2991_p4 }
  0x86   : > { %2334 = vsyncadd (%p2992_p0), [#allocation5], 4294966656  ;;  %p2993_p12 = pmov %p2992_p0 }
  0x87   : > { %p2994_p13 = pmov %p2992_p0 }
  0x88   : > { %2336 = dma.done.wait (%p2993_p12), [#allocation8], 2560  }
  0x89   : > { %2338 = vsyncadd (%p2994_p13), [#allocation8], 4294964736  ;;  %p2995_p7 = pmov %p2992_p0 }
  0x8a   : > { %p2996_p2 = pmov %p2992_p0 }
  0x8b   : > { %2340 = dma.done.wait (%p2995_p7), [#allocation11], 512  }
  0x8c   : > { %2342 = vsyncadd (%p2996_p2), [#allocation11], 4294966784  ;;  %s2977_s30 = sand.u32 1, %s2357_s20   ;;  %p2997_p10 = scmp.ne.s32.totalorder %s2465_s0, 0 }
  0x8d   : > { %s2632_s12 = sshll.u32 %s2977_s30, 3  ;;  %v351_v0 = vld [vmem:[%s2966_s7] sm:$0x1] (!%p2997_p10)  ;;  %vm352_vm0 = vcmask (!%p2997_p10), 253952  }
  0x8e   : > { %350 = sbr.rel (%p2997_p10) target bundleno = 149 (0x95), region = 68  ;;  %353 = vst.msk [vmem:[#allocation13] sm:$0x1] (!%p2997_p10), %vm352_vm0, %v351_v0 }
  0x95 PF: > { %v421_v1 = vld [vmem:[#allocation7] sm:$0xff]  ;;  %v422_v2 = vld [vmem:[#allocation7 + $0x8] sm:$0xff]  ;;  %v423_v3 = vld [vmem:[#allocation7 + $0x10] sm:$0xff]  ;;  %v2374_v4 = vmov 0.0|0.0   ;;  %s2643_s24 = sshll.u32 %s2465_s0, 3  ;;  %vm2375_vm1 = vmmov 0  }
  0x96   : > { %1911 = vmatprep.subr.bf16.mxu0 %v2374_v4  ;;  %v1912_v5 = vpack.c.bf16 %v422_v2, %v421_v1  ;;  %v424_v6 = vld [vmem:[#allocation7 + $0x18] sm:$0xff]  ;;  %1935 = vmatprep.subr.bf16.mxu1 %v2374_v4  ;;  %v2376_v7 = vmov 0.0   ;;  %s2648_s27 = sld [smem:[#allocation3 + %s2643_s24]]  ;;  %s358_s29 = sadd.s32 1, %s2643_s24  ;;  %v425_v9 = vld [vmem:[#allocation7 + $0x20] sm:$0xff]  ;;  %v426_v10 = vld [vmem:[#allocation7 + $0x28] sm:$0xff] }
  0x97   : > { %1809 = vmatprep.mubr.msk.f32.mxu0 %vm2375_vm1, %v2376_v7  ;;  %1820 = vmatprep.mubr.msk.f32.mxu1 %vm2375_vm1, %v2376_v7  ;;  %v1915_v8 = vpack.c.bf16 %v424_v6, %v423_v3  ;;  %s2655_s25 = sld [smem:[#allocation3 + %s358_s29]]  ;;  %s362_s26 = sadd.s32 2, %s2643_s24  ;;  %v515_v11 = vld [vmem:[#allocation9] sm:$0xff]  ;;  %v516_v12 = vld [vmem:[#allocation9 + $0x8] sm:$0xff]  ;;  %v517_v14 = vld [vmem:[#allocation9 + $0x10] sm:$0xff]  ;;  %v1918_v16 = vpack.c.bf16 %v426_v10, %v425_v9  ;;  %vm407_vm2 = vcmask 1040384   ;;  %v616_v6 = vlaneseq }
  0x98   : > { %1913 = vmatpush3.bf16.msra.mxu0 %v1912_v5  ;;  %s2661_s13 = sld [smem:[#allocation3 + %s362_s26]]  ;;  %s366_s15 = sadd.s32 3, %s2643_s24  ;;  %v2669_v13 = vpack.c.bf16 %v516_v12, %v515_v11  ;;  %v518_v15 = vld [vmem:[#allocation9 + $0x18] sm:$0xff]  ;;  %v427_v17 = vld [vmem:[#allocation7 + $0x30] sm:$0xff]  ;;  %v429_v20 = vld [vmem:[#allocation7 + $0x40] sm:$0xff]  ;;  %vm519_vm3 = vcmask 261120  }
  0x99   : > { %1914 = vmatprep.subr.bf16.mxu0 %v2374_v4  ;;  %s2666_s17 = sld [smem:[#allocation3 + %s366_s15]]  ;;  %s2979_s11 = sadd.s32 4, %s2643_s24  ;;  %v428_v18 = vld [vmem:[#allocation7 + $0x38] sm:$0xff]  ;;  %v2683_v19 = vpack.c.bf16 %v518_v15, %v517_v14  ;;  %v430_v21 = vld [vmem:[#allocation7 + $0x48] sm:$0xff]  ;;  %v2697_v29 = vld [vmem:[#allocation13] sm:$0x1] }
  0x9a   : > { %s2673_s16 = sld [smem:[#allocation3 + %s2979_s11]]  ;;  %s2978_s14 = sadd.s32 5, %s2643_s24  ;;  %1937 = vmatpush3.bf16.msra.mxu1 %v2669_v13  ;;  %v1921_v24 = vpack.c.bf16 %v428_v18, %v427_v17  ;;  %vm409_vm4 = vcmask 1041408   ;;  %v1924_v31 = vpack.c.bf16 %v430_v21, %v429_v20  ;;  %v431_v34 = vld [vmem:[#allocation7 + $0x50] sm:$0xff]  ;;  %v432_v35 = vld [vmem:[#allocation7 + $0x58] sm:$0xff]  ;;  %vm411_vm5 = vcmask 1042432  }
  0x9b   : > { %s2678_s21 = sld [smem:[#allocation3 + %s2978_s14]]  ;;  %s2980_s18 = sadd.s32 6, %s2643_s24  ;;  %1938 = vmatprep.subr.bf16.mxu1 %v2374_v4  ;;  %v1927_v39 = vpack.c.bf16 %v432_v35, %v431_v34  ;;  %vm413_vm6 = vcmask 1043456   ;;  %v433_v41 = vld [vmem:[#allocation7 + $0x60] sm:$0xff]  ;;  %v434_v42 = vld [vmem:[#allocation7 + $0x68] sm:$0xff]  ;;  %vm415_vm7 = vcmask 1044480  }
  0x9c   : > { %1916 = vmatpush3.bf16.msra.mxu0 %v1915_v8  ;;  %s2688_s23 = sld [smem:[#allocation3 + %s2980_s18]]  ;;  %s356_s30 = scalar_lea.vmem [#allocation4], %s2648_s27  ;;  %v1930_v46 = vpack.c.bf16 %v434_v42, %v433_v41  ;;  %v435_v47 = vld [vmem:[#allocation7 + $0x70] sm:$0xff]  ;;  %v436_v48 = vld [vmem:[#allocation7 + $0x78] sm:$0xff]  ;;  %vm417_vm8 = vcmask 1045504   ;;  %vm419_vm9 = vcmask 1046528  }
  0x9d   : > { %1917 = vmatprep.subr.bf16.mxu0 %v2374_v4  ;;  %v357_v22 = vld [vmem:[%s356_s30] sm:$0x1]  ;;  %s360_s10 = scalar_lea.vmem [#allocation4], %s2655_s25  ;;  %s382_s14 = sadd.s32 7, %s2643_s24  ;;  %v1933_v52 = vpack.c.bf16 %v436_v48, %v435_v47  ;;  %v617_v8 = vshrl.u32 %v616_v6, 7  ;;  %vm1424_vm10 = vcmask 253952  }
  0x9e   : > { %v361_v23 = vld [vmem:[%s360_s10] sm:$0x1]  ;;  %s364_s11 = scalar_lea.vmem [#allocation4], %s2661_s13  ;;  %1940 = vmatpush3.bf16.msra.mxu1 %v2683_v19  ;;  %s2701_s30 = sld [smem:[#allocation3 + %s382_s14]] }
  0x9f   : > { %v365_v25 = vld [vmem:[%s364_s11] sm:$0x1]  ;;  %v387_v26 = vrot.slane %v361_v23, 7  ;;  %s368_s18 = scalar_lea.vmem [#allocation4], %s2666_s17  ;;  %1941 = vmatprep.subr.bf16.mxu1 %v2374_v4  ;;  %p625_p11 = scmp.lt.s32.totalorder %s2643_s24, 12  ;;  %v618_v10 = vsub.s32 0, %v617_v8 }
  0xa0   : > { %1919 = vmatpush3.bf16.msra.mxu0 %v1918_v16  ;;  %v369_v27 = vld [vmem:[%s368_s18] sm:$0x1]  ;;  %v390_v28 = vrot.slane %v365_v25, 6  ;;  %s372_s10 = scalar_lea.vmem [#allocation4], %s2673_s16  ;;  %s2377_s16 = smov 32  }
  0xa1   : > { %1920 = vmatprep.subr.bf16.mxu0 %v2374_v4  ;;  %v408_v30 = vsel %vm407_vm2, %v357_v22, %v387_v26  ;;  %v373_v32 = vld [vmem:[%s372_s10] sm:$0x1]  ;;  %v393_v33 = vrot.slane %v369_v27, 5  ;;  %1821 = vmatmul.mubr.msk.f32.vlgmr.msra.gmra.mrb[0].mxu1 %vm519_vm3, %v2697_v29  ;;  %s376_s27 = scalar_lea.vmem [#allocation4], %s2678_s21  ;;  %s2378_s18 = smov 64   ;;  %v619_v17 = vrot.slane %v2697_v29, %v618_v10 }
  0xa2   : > { %v410_v36 = vsel %vm409_vm4, %v408_v30, %v390_v28  ;;  %1943 = vmatpush3.bf16.msra.mxu1 %v2669_v13  ;;  %1831 = vmatprep.mubr.msk.f32.mxu1 %vm2375_vm1, %v2376_v7  ;;  %v377_v37 = vld [vmem:[%s376_s27] sm:$0x1]  ;;  %v396_v38 = vrot.slane %v373_v32, 4  ;;  %s380_s25 = scalar_lea.vmem [#allocation4], %s2688_s23  ;;  %s2379_s10 = smov 96  }
  0xa3   : > { %1944 = vmatprep.subr.bf16.mxu1 %v2374_v4  ;;  %v412_v40 = vsel %vm411_vm5, %v410_v36, %v393_v33  ;;  %v381_v43 = vld [vmem:[%s380_s25] sm:$0x1]  ;;  %v399_v44 = vrot.slane %v377_v37, 3  ;;  %s626_s21 = scalar_select %p625_p11, 1, 0 }
  0xa4   : > { %1922 = vmatpush3.bf16.msra.mxu0 %v1921_v24  ;;  %v414_v45 = vsel %vm413_vm6, %v412_v40, %v396_v38  ;;  %s384_s13 = scalar_lea.vmem [#allocation4], %s2701_s30  ;;  %v402_v50 = vrot.slane %v381_v43, 2  ;;  %v1690_v58 = vld [vmem:[%s2963_s4] ss:$0 sm:$0xff]  ;;  %p745_p1 = scmp.lt.s32.totalorder %s358_s29, 12 }
  0xa5   : > { %1923 = vmatprep.subr.bf16.mxu0 %v2374_v4  ;;  %v385_v49 = vld [vmem:[%s384_s13] sm:$0x1]  ;;  %v416_v51 = vsel %vm415_vm7, %v414_v45, %v399_v44  ;;  %s627_s23 = scvt.s32.f32 %s626_s21  ;;  %p856_p3 = scmp.lt.s32.totalorder %s362_s26, 12 }
  0xa6   : > { %1946 = vmatpush3.bf16.msra.mxu1 %v2683_v19  ;;  %v405_v53 = vrot.slane %v385_v49, 1  ;;  %v418_v54 = vsel %vm417_vm8, %v416_v51, %v402_v50  ;;  %s746_s27 = scalar_select %p745_p1, 1, 0 }
  0xa7   : > { %1947 = vmatprep.subr.bf16.mxu1 %v2374_v4  ;;  %s630_s30 = ssub.f32 1.0, %s627_s23  ;;  %v628_v24 = vstv %s627_s23  ;;  %p967_p6 = scmp.lt.s32.totalorder %s366_s15, 12 }
  0xa8   : > { %1925 = vmatpush3.bf16.msra.mxu0 %v1924_v31  ;;  %v420_v55 = vsel %vm419_vm9, %v418_v54, %v405_v53  ;;  %s747_s25 = scvt.s32.f32 %s746_s27  ;;  %s2998_s15 = sadd.s32 4, %s2643_s24 }
  0xa9   : > { %1926 = vmatprep.subr.bf16.mxu0 %v2374_v4  ;;  %v631_v9 = vstv %s630_s30  ;;  %s857_s29 = scalar_select %p856_p3, 1, 0 }
  0xaa   : > { %v632_v11 = vmul.f32 %v631_v9, %v2697_v29  ;;  %s750_s13 = ssub.f32 1.0, %s747_s25  ;;  %v748_v47 = vstv %s747_s25  ;;  %p1078_p5 = scmp.lt.s32.totalorder %s2998_s15, 12 }
  0xab   : > { %s858_s17 = scvt.s32.f32 %s857_s29  ;;  %p1411_p4 = scmp.lt.s32.totalorder %s382_s14, 12 }
  0xac   : > { %1928 = vmatpush3.bf16.msra.mxu0 %v1927_v39  ;;  %v637_v12 = vrot.slane %v632_v11, %v618_v10  ;;  %v751_v48 = vstv %s750_s13  ;;  %s968_s26 = scalar_select %p967_p6, 1, 0 }
  0xad   : > { %1929 = vmatprep.subr.bf16.mxu0 %v2374_v4  ;;  %s861_s11 = ssub.f32 1.0, %s858_s17  ;;  %v859_v10 = vstv %s858_s17  ;;  %s2999_s13 = sadd.s32 5, %s2643_s24 }
  0xae   : > { %s969_s21 = scvt.s32.f32 %s968_s26  ;;  %p1189_p9 = scmp.lt.s32.totalorder %s2999_s13, 12 }
  0xaf   : > { %v862_v11 = vstv %s861_s11  ;;  %s1079_s30 = scalar_select %p1078_p5, 1, 0 }
  0xb0   : > { %1931 = vmatpush3.bf16.msra.mxu0 %v1930_v46  ;;  %s972_s23 = ssub.f32 1.0, %s969_s21  ;;  %s3000_s26 = sadd.s32 6, %s2643_s24 }
  0xb1   : > { %1932 = vmatprep.subr.bf16.mxu0 %v2374_v4  ;;  %s1080_s27 = scvt.s32.f32 %s1079_s30  ;;  %p1300_p8 = scmp.lt.s32.totalorder %s3000_s26, 12 }
  0xb2   : > { %s1190_s29 = scalar_select %p1189_p9, 1, 0 }
  0xb3   : > { %s1083_s25 = ssub.f32 1.0, %s1080_s27  ;;  %p3001_p12 = scmp.eq.s32.totalorder %s2465_s0, 1 }
  0xb4   : > { %1934 = vmatpush3.bf16.msra.mxu0 %v1933_v52  ;;  %s1191_s17 = scvt.s32.f32 %s1190_s29 }
  0xb5   : > { %1959 = vmatprep.subr.bf16.mxu0 %v2374_v4 }
  0xb6   : > { %s1194_s11 = ssub.f32 1.0, %s1191_s17 }
  0xb7   : > { %1810 = vmatmul.mubr.f32.vlgmr.msra.gmra.mrb[0].mxu0 %v420_v55 }
  0xb8   : > { %1961 = vmatpush3.bf16.msra.mxu0 %v2669_v13  ;;  %1864 = vmatprep.mubr.msk.f32.mxu0 %vm2375_vm1, %v2376_v7 }
  0xb9   : > { %1962 = vmatprep.subr.bf16.mxu0 %v2374_v4 }
  0xbc   : > { %1964 = vmatpush3.bf16.msra.mxu0 %v2683_v19 }
  0xbd   : > { %1971 = vmatprep.subr.bf16.mxu0 %v2374_v4 }
 0x174   : > { %v589_v56 = vpop.f32.mrb[0].mxu1 }
 0x175   : > { %v1822_v57 = vpop.f32.mrb[1].mxu1 }
 0x18a   : > { %v510_v59 = vpop.f32.mrb[0].mxu0 }
 0x18b   : > { %v2737_v60 = vadd.f32 %v1690_v58, %v510_v59  ;;  %v1811_v61 = vpop.f32.mrb[1].mxu0 }
 0x18d   : > { %v590_v62 = vadd.f32 %v589_v56, %v2737_v60  ;;  %v646_v29 = vrot.slane %v2737_v60, 1  ;;  %v757_v54 = vrot.slane %v2737_v60, 2 }
 0x18f   : > { %600 = vrot.lane.b32.xlu0 %v590_v62, %s2377_s16  ;;  %v1692_v63 = vmul.f32 -1.442695, %v590_v62 }
 0x191   : > { %2085 = vpow2.f32 %v1692_v63 }
 0x19b   : > { %v2086_v0 = vpop.eup %2085 }
 0x19c   : > { %v596_v1 = vadd.f32 1.0, %v2086_v0 }
 0x19e   : > { %2087 = vrcp.f32 %v596_v1 }
 0x1a8   : > { %v2088_v2 = vpop.eup %2087 }
 0x1a9   : > { %v610_v20 = vsub.f32 1.0, %v2088_v2 }
 0x201   : > { %v601_v3 = vpop.permute.xlu0 %600 }
 0x202   : > { %v603_v5 = vmul.f32 %v2088_v2, %v601_v3 }
 0x204   : > { %605 = vrot.lane.b32.xlu0 %v603_v5, %s2378_s18 }
 0x208   : > { %638 = vrot.lane.b32.xlu0 %v637_v12, %s2377_s16 }
 0x276   : > { %v606_v14 = vpop.permute.xlu0 %605 }
 0x277   : > { %v608_v15 = vadd.f32 %v606_v14, %v590_v62 }
 0x279   : > { %2089 = vtanh.f32 %v608_v15 }
 0x27a   : > { %v639_v26 = vpop.permute.xlu0 %638 }
 0x283   : > { %v2090_v16 = vpop.eup %2089 }
 0x284   : > { %612 = vrot.lane.b32.xlu1 %v2090_v16, %s2379_s10 }
 0x288   : > { %620 = vrot.lane.b32.xlu1 %v619_v17, %s2377_s16 }
 0x2f6   : > { %v613_v18 = vpop.permute.xlu1 %612 }
 0x2f7   : > { %v615_v22 = vmul.f32 %v613_v18, %v610_v20  ;;  %v868_v18 = vrot.slane %v2737_v60, 3 }
 0x2fa   : > { %v621_v21 = vpop.permute.xlu1 %620 }
 0x2fb   : > { %v623_v23 = vmul.f32 %v2088_v2, %v621_v21 }
 0x2fd   : > { %v624_v25 = vadd.f32 %v623_v23, %v615_v22 }
 0x2ff   : > { %v629_v27 = vmul.f32 %v628_v24, %v624_v25 }
 0x301   : > { %v2748_v28 = vadd.f32 %v639_v26, %v629_v27 }
 0x303   : > { %643 = vrot.lane.b32.xlu1 %v2748_v28, %s2379_s10  ;;  %v752_v51 = vmul.f32 %v751_v48, %v2748_v28 }
 0x375   : > { %v644_v30 = vpop.permute.xlu1 %643 }
 0x376   : > { %1832 = vmatmul.mubr.msk.f32.vlgmr.msra.gmra.mrb[2].mxu1 %vm519_vm3, %v644_v30 }
 0x377   : > { %1949 = vmatpush3.bf16.msra.mxu1 %v2669_v13  ;;  %1842 = vmatprep.mubr.msk.f32.mxu1 %vm2375_vm1, %v2376_v7 }
 0x378   : > { %1950 = vmatprep.subr.bf16.mxu1 %v2374_v4 }
 0x37b   : > { %1952 = vmatpush3.bf16.msra.mxu1 %v2683_v19 }
 0x37c   : > { %1953 = vmatprep.subr.bf16.mxu1 %v2374_v4 }
 0x449   : > { %v716_v31 = vpop.f32.mrb[2].mxu1 }
 0x44a   : > { %v717_v32 = vadd.f32 %v716_v31, %v646_v29  ;;  %v1833_v33 = vpop.f32.mrb[3].mxu1 }
 0x44c   : > { %727 = vrot.lane.b32.xlu0 %v717_v32, %s2377_s16  ;;  %v1694_v34 = vmul.f32 -1.442695, %v717_v32 }
 0x44e   : > { %2091 = vpow2.f32 %v1694_v34 }
 0x458   : > { %v2092_v35 = vpop.eup %2091 }
 0x459   : > { %v723_v36 = vadd.f32 1.0, %v2092_v35 }
 0x45b   : > { %2093 = vrcp.f32 %v723_v36 }
 0x465   : > { %v2094_v37 = vpop.eup %2093 }
 0x466   : > { %v737_v43 = vsub.f32 1.0, %v2094_v37  ;;  %v743_v45 = vmul.f32 %v2094_v37, %v2748_v28 }
 0x4be   : > { %v728_v38 = vpop.permute.xlu0 %727 }
 0x4bf   : > { %v730_v39 = vmul.f32 %v2094_v37, %v728_v38  ;;  %v970_v37 = vstv %s969_s21  ;;  %v973_v38 = vstv %s972_s23  ;;  %s1301_s21 = scalar_select %p1300_p8, 1, 0 }
 0x4c1   : > { %732 = vrot.lane.b32.xlu1 %v730_v39, %s2378_s18  ;;  %s1302_s23 = scvt.s32.f32 %s1301_s21 }
 0x4c3   : > { %s1305_s15 = ssub.f32 1.0, %s1302_s23 }
 0x533   : > { %v733_v40 = vpop.permute.xlu1 %732 }
 0x534   : > { %v735_v41 = vadd.f32 %v733_v40, %v717_v32 }
 0x536   : > { %2095 = vtanh.f32 %v735_v41 }
 0x540   : > { %v2096_v42 = vpop.eup %2095 }
 0x541   : > { %739 = vrot.lane.b32.xlu0 %v2096_v42, %s2379_s10 }
 0x5b3   : > { %v740_v44 = vpop.permute.xlu0 %739 }
 0x5b4   : > { %v742_v46 = vmul.f32 %v740_v44, %v737_v43  ;;  %v979_v44 = vrot.slane %v2737_v60, 4 }
 0x5b6   : > { %v744_v49 = vadd.f32 %v743_v45, %v742_v46 }
 0x5b8   : > { %v749_v50 = vmul.f32 %v748_v47, %v744_v49 }
 0x5ba   : > { %v2767_v52 = vadd.f32 %v752_v51, %v749_v50 }
 0x5bc   : > { %755 = vrot.lane.b32.xlu1 %v2767_v52, %s2379_s10  ;;  %v863_v15 = vmul.f32 %v862_v11, %v2767_v52 }
 0x62e   : > { %v756_v53 = vpop.permute.xlu1 %755 }
 0x62f   : > { %1843 = vmatmul.mubr.msk.f32.vlgmr.msra.gmra.mrb[4].mxu1 %vm519_vm3, %v756_v53 }
 0x630   : > { %1955 = vmatpush3.bf16.msra.mxu1 %v2669_v13  ;;  %1853 = vmatprep.mubr.msk.f32.mxu1 %vm2375_vm1, %v2376_v7 }
 0x631   : > { %1956 = vmatprep.subr.bf16.mxu1 %v2374_v4 }
 0x634   : > { %1958 = vmatpush3.bf16.msra.mxu1 %v2683_v19 }
 0x635   : > { %1965 = vmatprep.subr.bf16.mxu1 %v2374_v4 }
 0x702   : > { %v827_v55 = vpop.f32.mrb[4].mxu1 }
 0x703   : > { %v828_v56 = vadd.f32 %v827_v55, %v757_v54  ;;  %v1844_v57 = vpop.f32.mrb[5].mxu1 }
 0x705   : > { %838 = vrot.lane.b32.xlu0 %v828_v56, %s2377_s16  ;;  %v1696_v58 = vmul.f32 -1.442695, %v828_v56 }
 0x707   : > { %2097 = vpow2.f32 %v1696_v58 }
 0x711   : > { %v2098_v59 = vpop.eup %2097 }
 0x712   : > { %v834_v61 = vadd.f32 1.0, %v2098_v59 }
 0x714   : > { %2099 = vrcp.f32 %v834_v61 }
 0x71e   : > { %v2100_v62 = vpop.eup %2099 }
 0x71f   : > { %v848_v5 = vsub.f32 1.0, %v2100_v62  ;;  %v854_v8 = vmul.f32 %v2100_v62, %v2767_v52 }
 0x777   : > { %v839_v63 = vpop.permute.xlu0 %838 }
 0x778   : > { %v841_v0 = vmul.f32 %v2100_v62, %v839_v63  ;;  %v1081_v63 = vstv %s1080_s27  ;;  %s2380_s27 = smov [#allocation13]  }
 0x77a   : > { %843 = vrot.lane.b32.xlu1 %v841_v0, %s2378_s18  ;;  %v1084_v0 = vstv %s1083_s25  ;;  %s1569_s25 = sshll.u32 %s2380_s27, 4  ;;  %s1570_s25 = int_to_ptr.vmem [resolvable:$true] %s1569_s25 }
 0x77b   : > { %s2259_s13 = scalar_lea.vmem %s1570_s25, 16  ;;  %s2265_s29 = scalar_lea.vmem %s1570_s25, 32 }
 0x77c   : > { %p2260_p0 = scmp.ne.s32.totalorder %s1570_s25, %s2259_s13  ;;  %p2266_p2 = scmp.lt.s32.totalorder %s1570_s25, %s1570_s25 }
 0x77d   : > { %p2267_p10 = scmp.lt.s32.totalorder %s2265_s29, %s2259_s13 }
 0x77e   : > { %p2261_p13 = pnand %p2260_p0, %p3001_p12 }
 0x77f   : > { %p2268_p11 = por %p2267_p10, %p2266_p2 }
 0x780   : > { %p2262_p7 = pneg %p2261_p13 }
 0x782   : > { %p2269_p1 = pnand %p2268_p11, %p2262_p7 }
 0x7ec   : > { %v844_v1 = vpop.permute.xlu1 %843 }
 0x7ed   : > { %v846_v2 = vadd.f32 %v844_v1, %v828_v56 }
 0x7ef   : > { %2101 = vtanh.f32 %v846_v2 }
 0x7f9   : > { %v2102_v3 = vpop.eup %2101 }
 0x7fa   : > { %850 = vrot.lane.b32.xlu0 %v2102_v3, %s2379_s10 }
 0x86c   : > { %v851_v6 = vpop.permute.xlu0 %850 }
 0x86d   : > { %v853_v9 = vmul.f32 %v851_v6, %v848_v5 }
 0x86f   : > { %v855_v12 = vadd.f32 %v854_v8, %v853_v9  ;;  %v1090_v8 = vrot.slane %v2737_v60, 5 }
 0x871   : > { %v860_v14 = vmul.f32 %v859_v10, %v855_v12 }
 0x873   : > { %v2786_v16 = vadd.f32 %v863_v15, %v860_v14 }
 0x875   : > { %866 = vrot.lane.b32.xlu1 %v2786_v16, %s2379_s10  ;;  %v974_v41 = vmul.f32 %v973_v38, %v2786_v16 }
 0x8e7   : > { %v867_v17 = vpop.permute.xlu1 %866 }
 0x8e8   : > { %1854 = vmatmul.mubr.msk.f32.vlgmr.msra.gmra.mrb[6].mxu1 %vm519_vm3, %v867_v17 }
 0x8e9   : > { %1967 = vmatpush3.bf16.msra.mxu1 %v2669_v13  ;;  %1875 = vmatprep.mubr.msk.f32.mxu1 %vm2375_vm1, %v2376_v7 }
 0x8ea   : > { %1968 = vmatprep.subr.bf16.mxu1 %v2374_v4 }
 0x8ed   : > { %1970 = vmatpush3.bf16.msra.mxu1 %v2683_v19 }
 0x8ee   : > { %1977 = vmatprep.subr.bf16.mxu1 %v2374_v4 }
 0x9bb   : > { %v938_v20 = vpop.f32.mrb[6].mxu1 }
 0x9bc   : > { %v939_v21 = vadd.f32 %v938_v20, %v868_v18  ;;  %v1855_v22 = vpop.f32.mrb[7].mxu1 }
 0x9be   : > { %949 = vrot.lane.b32.xlu0 %v939_v21, %s2377_s16  ;;  %v1698_v23 = vmul.f32 -1.442695, %v939_v21 }
 0x9c0   : > { %2103 = vpow2.f32 %v1698_v23 }
 0x9ca   : > { %v2104_v24 = vpop.eup %2103 }
 0x9cb   : > { %v945_v25 = vadd.f32 1.0, %v2104_v24 }
 0x9cd   : > { %2105 = vrcp.f32 %v945_v25 }
 0x9d7   : > { %v2106_v26 = vpop.eup %2105 }
 0x9d8   : > { %v959_v33 = vsub.f32 1.0, %v2106_v26  ;;  %v965_v35 = vmul.f32 %v2106_v26, %v2786_v16 }
 0xa30   : > { %v950_v27 = vpop.permute.xlu0 %949 }
 0xa31   : > { %v952_v30 = vmul.f32 %v2106_v26, %v950_v27  ;;  %v1192_v26 = vstv %s1191_s17  ;;  %v1195_v27 = vstv %s1194_s11 }
 0xa33   : > { %954 = vrot.lane.b32.xlu1 %v952_v30, %s2378_s18 }
 0xaa5   : > { %v955_v29 = vpop.permute.xlu1 %954 }
 0xaa6   : > { %v957_v31 = vadd.f32 %v955_v29, %v939_v21 }
 0xaa8   : > { %2107 = vtanh.f32 %v957_v31 }
 0xab2   : > { %v2108_v32 = vpop.eup %2107 }
 0xab3   : > { %961 = vrot.lane.b32.xlu0 %v2108_v32, %s2379_s10 }
 0xb25   : > { %v962_v34 = vpop.permute.xlu0 %961 }
 0xb26   : > { %v964_v36 = vmul.f32 %v962_v34, %v959_v33  ;;  %v1201_v34 = vrot.slane %v2737_v60, 6 }
 0xb28   : > { %v966_v39 = vadd.f32 %v965_v35, %v964_v36 }
 0xb2a   : > { %v971_v40 = vmul.f32 %v970_v37, %v966_v39 }
 0xb2c   : > { %v2805_v42 = vadd.f32 %v974_v41, %v971_v40 }
 0xb2e   : > { %977 = vrot.lane.b32.xlu1 %v2805_v42, %s2379_s10  ;;  %v1085_v2 = vmul.f32 %v1084_v0, %v2805_v42 }
 0xba0   : > { %v978_v43 = vpop.permute.xlu1 %977 }
 0xba1   : > { %1865 = vmatmul.mubr.msk.f32.vlgmr.msra.gmra.mrb[2].mxu0 %vm519_vm3, %v978_v43 }
 0xba2   : > { %1973 = vmatpush3.bf16.msra.mxu0 %v2669_v13  ;;  %1886 = vmatprep.mubr.msk.f32.mxu0 %vm2375_vm1, %v2376_v7 }
 0xba3   : > { %1974 = vmatprep.subr.bf16.mxu0 %v2374_v4 }
 0xba6   : > { %1976 = vmatpush3.bf16.msra.mxu0 %v2683_v19 }
 0xba7   : > { %1983 = vmatprep.subr.bf16.mxu0 %v2374_v4 }
 0xc74   : > { %v1049_v45 = vpop.f32.mrb[2].mxu0 }
 0xc75   : > { %v1050_v46 = vadd.f32 %v1049_v45, %v979_v44  ;;  %v1866_v47 = vpop.f32.mrb[3].mxu0 }
 0xc77   : > { %1060 = vrot.lane.b32.xlu0 %v1050_v46, %s2377_s16  ;;  %v1700_v48 = vmul.f32 -1.442695, %v1050_v46 }
 0xc79   : > { %2109 = vpow2.f32 %v1700_v48 }
 0xc83   : > { %v2110_v49 = vpop.eup %2109 }
 0xc84   : > { %v1056_v50 = vadd.f32 1.0, %v2110_v49 }
 0xc86   : > { %2111 = vrcp.f32 %v1056_v50 }
 0xc90   : > { %v2112_v51 = vpop.eup %2111 }
 0xc91   : > { %v1070_v58 = vsub.f32 1.0, %v2112_v51  ;;  %v1076_v61 = vmul.f32 %v2112_v51, %v2805_v42 }
 0xce9   : > { %v1061_v53 = vpop.permute.xlu0 %1060 }
 0xcea   : > { %v1063_v54 = vmul.f32 %v2112_v51, %v1061_v53  ;;  %v1303_v51 = vstv %s1302_s23  ;;  %v1306_v53 = vstv %s1305_s15 }
 0xcec   : > { %1065 = vrot.lane.b32.xlu1 %v1063_v54, %s2378_s18 }
 0xd5e   : > { %v1066_v55 = vpop.permute.xlu1 %1065 }
 0xd5f   : > { %v1068_v56 = vadd.f32 %v1066_v55, %v1050_v46 }
 0xd61   : > { %2113 = vtanh.f32 %v1068_v56 }
 0xd6b   : > { %v2114_v57 = vpop.eup %2113 }
 0xd6c   : > { %1072 = vrot.lane.b32.xlu0 %v2114_v57, %s2379_s10 }
 0xdde   : > { %v1073_v59 = vpop.permute.xlu0 %1072 }
 0xddf   : > { %v1075_v62 = vmul.f32 %v1073_v59, %v1070_v58  ;;  %v1312_v59 = vrot.slane %v2737_v60, 7  ;;  %v1447_v60 = vld [vmem:[#allocation10] sm:$0xff] }
 0xde1   : > { %v1077_v1 = vadd.f32 %v1076_v61, %v1075_v62 }
 0xde3   : > { %v1082_v3 = vmul.f32 %v1081_v63, %v1077_v1 }
 0xde5   : > { %v2824_v5 = vadd.f32 %v1085_v2, %v1082_v3 }
 0xde7   : > { %1088 = vrot.lane.b32.xlu1 %v2824_v5, %s2379_s10  ;;  %v1196_v31 = vmul.f32 %v1195_v27, %v2824_v5 }
 0xe59   : > { %v1089_v6 = vpop.permute.xlu1 %1088 }
 0xe5a   : > { %1876 = vmatmul.mubr.msk.f32.vlgmr.msra.gmra.mrb[8].mxu1 %vm519_vm3, %v1089_v6 }
 0xe5b   : > { %1979 = vmatpush3.bf16.msra.mxu1 %v2669_v13  ;;  %1897 = vmatprep.mubr.msk.f32.mxu1 %vm2375_vm1, %v2376_v7 }
 0xe5c   : > { %1980 = vmatprep.subr.bf16.mxu1 %v2374_v4 }
 0xe5f   : > { %1982 = vmatpush3.bf16.msra.mxu1 %v2683_v19 }
 0xf2d   : > { %v1160_v9 = vpop.f32.mrb[8].mxu1 }
 0xf2e   : > { %v1161_v10 = vadd.f32 %v1160_v9, %v1090_v8  ;;  %v1877_v11 = vpop.f32.mrb[9].mxu1 }
 0xf2f   : > { %v1448_v11 = vld [vmem:[#allocation10 + $0x8] sm:$0xff] }
 0xf30   : > { %1171 = vrot.lane.b32.xlu0 %v1161_v10, %s2377_s16  ;;  %v1702_v12 = vmul.f32 -1.442695, %v1161_v10 }
 0xf32   : > { %2115 = vpow2.f32 %v1702_v12  ;;  %v1449_v12 = vld [vmem:[#allocation10 + $0x10] sm:$0xff] }
 0xf3c   : > { %v2116_v14 = vpop.eup %2115 }
 0xf3d   : > { %v1167_v15 = vadd.f32 1.0, %v2116_v14 }
 0xf3f   : > { %2117 = vrcp.f32 %v1167_v15  ;;  %v1984_v15 = vpack.c.bf16 %v1448_v11, %v1447_v60 }
 0xf49   : > { %v2118_v13 = vpop.eup %2117 }
 0xf4a   : > { %v1181_v22 = vsub.f32 1.0, %v2118_v13  ;;  %v1187_v24 = vmul.f32 %v2118_v13, %v2824_v5 }
 0xfa2   : > { %v1172_v17 = vpop.permute.xlu0 %1171 }
 0xfa3   : > { %v1174_v18 = vmul.f32 %v2118_v13, %v1172_v17  ;;  %v1450_v13 = vld [vmem:[#allocation10 + $0x18] sm:$0xff] }
 0xfa4   : > { %v1987_v17 = vpack.c.bf16 %v1450_v13, %v1449_v12 }
 0xfa5   : > { %1176 = vrot.lane.b32.xlu1 %v1174_v18, %s2378_s18 }
0x1017   : > { %v1177_v20 = vpop.permute.xlu1 %1176 }
0x1018   : > { %v1179_v19 = vadd.f32 %v1177_v20, %v1161_v10 }
0x101a   : > { %2119 = vtanh.f32 %v1179_v19  ;;  %v1426_v19 = vrot.slane %v2767_v52, 7 }
0x1024   : > { %v2120_v21 = vpop.eup %2119 }
0x1025   : > { %1183 = vrot.lane.b32.xlu0 %v2120_v21, %s2379_s10 }
0x1097   : > { %v1184_v23 = vpop.permute.xlu0 %1183 }
0x1098   : > { %v1186_v25 = vmul.f32 %v1184_v23, %v1181_v22  ;;  %v1428_v23 = vrot.slane %v2786_v16, 6 }
0x109a   : > { %v1188_v30 = vadd.f32 %v1187_v24, %v1186_v25 }
0x109c   : > { %v1193_v29 = vmul.f32 %v1192_v26, %v1188_v30  ;;  %v1430_v26 = vrot.slane %v2805_v42, 5 }
0x109e   : > { %v2842_v32 = vadd.f32 %v1196_v31, %v1193_v29 }
0x10a0   : > { %1199 = vrot.lane.b32.xlu1 %v2842_v32, %s2379_s10  ;;  %v1307_v55 = vmul.f32 %v1306_v53, %v2842_v32  ;;  %v1434_v31 = vrot.slane %v2842_v32, 3 }
0x1112   : > { %v1200_v33 = vpop.permute.xlu1 %1199 }
0x1113   : > { %1887 = vmatmul.mubr.msk.f32.vlgmr.msra.gmra.mrb[4].mxu0 %vm519_vm3, %v1200_v33  ;;  %v1440_v33 = vsel %vm407_vm2, %v2748_v28, %v1426_v19  ;;  %v1707_v28 = vld [vmem:[%s2965_s6] ss:$0 sm:$0xff] }
0x1114   : > { %1908 = vmatprep.mubr.msk.f32.mxu0 %vm2375_vm1, %v2376_v7  ;;  %1985 = vmatpush3.bf16.msra.mxu0 %v1984_v15  ;;  %v1441_v52 = vsel %vm409_vm4, %v1440_v33, %v1428_v23 }
0x1115   : > { %1986 = vmatprep.subr.bf16.mxu0 %v2374_v4  ;;  %v1432_v4 = vrot.slane %v2824_v5, 4  ;;  %v1442_v16 = vsel %vm411_vm5, %v1441_v52, %v1430_v26 }
0x1118   : > { %1988 = vmatpush3.bf16.msra.mxu0 %v1987_v17 }
0x11e6   : > { %v1271_v35 = vpop.f32.mrb[4].mxu0 }
0x11e7   : > { %v1272_v36 = vadd.f32 %v1271_v35, %v1201_v34  ;;  %v1888_v37 = vpop.f32.mrb[5].mxu0 }
0x11e9   : > { %1282 = vrot.lane.b32.xlu0 %v1272_v36, %s2377_s16  ;;  %v1704_v38 = vmul.f32 -1.442695, %v1272_v36 }
0x11eb   : > { %2121 = vpow2.f32 %v1704_v38 }
0x11f5   : > { %v2122_v39 = vpop.eup %2121 }
0x11f6   : > { %v1278_v40 = vadd.f32 1.0, %v2122_v39 }
0x11f8   : > { %2123 = vrcp.f32 %v1278_v40 }
0x1202   : > { %v2124_v41 = vpop.eup %2123 }
0x1203   : > { %v1292_v47 = vsub.f32 1.0, %v2124_v41  ;;  %v1298_v49 = vmul.f32 %v2124_v41, %v2842_v32 }
0x125b   : > { %v1283_v43 = vpop.permute.xlu0 %1282 }
0x125c   : > { %v1285_v44 = vmul.f32 %v2124_v41, %v1283_v43 }
0x125e   : > { %1287 = vrot.lane.b32.xlu1 %v1285_v44, %s2378_s18 }
0x12d0   : > { %v1288_v45 = vpop.permute.xlu1 %1287 }
0x12d1   : > { %v1290_v7 = vadd.f32 %v1288_v45, %v1272_v36  ;;  %v1443_v36 = vsel %vm413_vm6, %v1442_v16, %v1432_v4 }
0x12d2   : > { %v1444_v42 = vsel %vm415_vm7, %v1443_v36, %v1434_v31 }
0x12d3   : > { %2125 = vtanh.f32 %v1290_v7 }
0x12dd   : > { %v2126_v46 = vpop.eup %2125 }
0x12de   : > { %1294 = vrot.lane.b32.xlu0 %v2126_v46, %s2379_s10 }
0x1350   : > { %v1295_v48 = vpop.permute.xlu0 %1294 }
0x1351   : > { %v1297_v50 = vmul.f32 %v1295_v48, %v1292_v47 }
0x1353   : > { %v1299_v54 = vadd.f32 %v1298_v49, %v1297_v50 }
0x1355   : > { %v1304_v56 = vmul.f32 %v1303_v51, %v1299_v54 }
0x1357   : > { %v1308_v57 = vadd.f32 %v1307_v55, %v1304_v56 }
0x1359   : > { %1310 = vrot.lane.b32.xlu1 %v1308_v57, %s2379_s10  ;;  %v1436_v34 = vrot.slane %v1308_v57, 2 }
0x135b   : > { %v1445_v5 = vsel %vm417_vm8, %v1444_v42, %v1436_v34 }
0x13cb   : > { %v1311_v58 = vpop.permute.xlu1 %1310 }
0x13cc   : > { %1898 = vmatmul.mubr.msk.f32.vlgmr.msra.gmra.mrb[10].mxu1 %vm519_vm3, %v1311_v58 }
0x149f   : > { %v1382_v61 = vpop.f32.mrb[10].mxu1 }
0x14a0   : > { %v1383_v62 = vadd.f32 %v1382_v61, %v1312_v59  ;;  %v1899_v63 = vpop.f32.mrb[11].mxu1 }
0x14a2   : > { %1393 = vrot.lane.b32.xlu0 %v1383_v62, %s2377_s16  ;;  %v1706_v0 = vmul.f32 -1.442695, %v1383_v62  ;;  %s1412_s16 = scalar_select %p1411_p4, 1, 0 }
0x14a4   : > { %2127 = vpow2.f32 %v1706_v0 }
0x14ae   : > { %v2128_v1 = vpop.eup %2127 }
0x14af   : > { %v1389_v2 = vadd.f32 1.0, %v2128_v1 }
0x14b1   : > { %2129 = vrcp.f32 %v1389_v2 }
0x14bb   : > { %v2130_v3 = vpop.eup %2129 }
0x14bc   : > { %v1403_v18 = vsub.f32 1.0, %v2130_v3  ;;  %v1409_v21 = vmul.f32 %v2130_v3, %v1308_v57 }
0x1514   : > { %v1394_v6 = vpop.permute.xlu0 %1393 }
0x1515   : > { %v1396_v8 = vmul.f32 %v2130_v3, %v1394_v6 }
0x1517   : > { %1398 = vrot.lane.b32.xlu1 %v1396_v8, %s2378_s18  ;;  %s1413_s18 = scvt.s32.f32 %s1412_s16 }
0x1519   : > { %s1416_s30 = ssub.f32 1.0, %s1413_s18  ;;  %v1414_v24 = vstv %s1413_s18 }
0x151b   : > { %v1417_v25 = vstv %s1416_s30 }
0x151c   : > { %v1418_v29 = vmul.f32 %v1417_v25, %v1308_v57 }
0x1589   : > { %v1399_v9 = vpop.permute.xlu1 %1398 }
0x158a   : > { %v1401_v10 = vadd.f32 %v1399_v9, %v1383_v62 }
0x158c   : > { %2131 = vtanh.f32 %v1401_v10 }
0x1596   : > { %v2132_v14 = vpop.eup %2131 }
0x1597   : > { %1405 = vrot.lane.b32.xlu0 %v2132_v14, %s2379_s10 }
0x1609   : > { %v1406_v20 = vpop.permute.xlu0 %1405 }
0x160a   : > { %v1408_v22 = vmul.f32 %v1406_v20, %v1403_v18 }
0x160c   : > { %v1410_v27 = vadd.f32 %v1409_v21, %v1408_v22 }
0x160e   : > { %v1415_v30 = vmul.f32 %v1414_v24, %v1410_v27 }
0x1610   : > { %v1419_v35 = vadd.f32 %v1418_v29, %v1415_v30 }
0x1612   : > { %v1438_v37 = vrot.slane %v1419_v35, 1 }
0x1614   : > { %v1446_v38 = vsel %vm419_vm9, %v1445_v5, %v1438_v37 }
0x1615   : > { %1459 = vrot.lane.b32.xlu1 %v1446_v38, %s2379_s10 }
0x1687   : > { %v1460_v32 = vpop.permute.xlu1 %1459 }
0x1688   : > { %1909 = vmatmul.mubr.msk.f32.vlgmr.msra.gmra.mrb[6].mxu0 %vm519_vm3, %v1460_v32 }
0x175b   : > { %v1529_v39 = vpop.f32.mrb[6].mxu0 }
0x175c   : > { %v1530_v40 = vadd.f32 %v1707_v28, %v1529_v39  ;;  %v1910_v41 = vpop.f32.mrb[7].mxu0 }
0x175e   : > { %1533 = vmax.xlane.f32.xlu0 %v1530_v40 }
0x1774   : > { %1421 = vrot.lane.b32.xlu0 %v1419_v35, %s2379_s10 }
0x17eb   : > { %v1534_v43 = vpop.xlane.xlu0 %1533 }
0x17ec   : > { %v1535_v44 = vsub.f32 %v1530_v40, %v1534_v43 }
0x17ee   : > { %v1536_v45 = vmul.f32 1.442695, %v1535_v44 }
0x17ef   : > { %v1422_v7 = vpop.permute.xlu0 %1421 }
0x17f0   : > { %2133 = vpow2.f32 %v1536_v45  ;;  %1425 = vst.msk [vmem:[#allocation13] sm:$0x1] %vm1424_vm10, %v1422_v7 }
0x17fa   : > { %v2134_v46 = vpop.eup %2133 }
0x17fb   : > { %1538 = vadd.xlane.f32.xlu1 %v2134_v46 }
0x17fc   : > { %2272 = shalt.err (!%p2269_p1)
}
0x17fd   : > { %s2273_s11 = scalar_lea.hbm %s2968_s9, 16  ;;  %p3002_p6 = pmov %p3001_p12 }
0x17fe   : > { %p2274_p3 = scmp.ne.s32.totalorder %s2968_s9, %s2273_s11  ;;  %p2279_p8 = scmp.lt.u32.totalorder %s2273_s11, %s2968_s9 }
0x1800   : > { %p2275_p5 = pnand %p2274_p3, %p3002_p6 }
0x1802   : > { %p2276_p9 = pneg %p2275_p5 }
0x1804   : > { %p2281_p4 = pnand %p2279_p8, %p2276_p9 }
0x1806   : > { %2284 = shalt.err (!%p2281_p4)
}
0x1807   : > { %p3003_p0 = pmov %p3002_p6  ;;  %s1710_s30 = sshll.u32 %s2465_s0, 7 }
0x1808   : > { %s3004_s24 = scalar_lea.vmem [#allocation12], %s2632_s12  ;;  %s2909_s29 = scalar_lea.hbm %s2967_s8, %s1710_s30 }
0x1809   : > { %2007 = dma.vmem_to_hbm [thread:$0]  (%p3003_p0), %s1570_s25, 16, %s2968_s9, [#allocation14]  }
0x180a   : > { %s1558_s14 = sshll.u32 %s3004_s24, 4  ;;  %s3005_s10 = smov %s3004_s24  ;;  %s2911_s14 = int_to_ptr.vmem [resolvable:$true] %s1558_s14 }
0x180b   : > { %s3006_s25 = sand.u32 1, %s2357_s20   ;;  %s2285_s11 = scalar_lea.vmem %s2911_s14, 128 }
0x180c   : > { %s1545_s17 = scalar_lea.sflag [#allocation6], %s3006_s25  ;;  %p2286_p12 = scmp.ne.s32.totalorder %s2911_s14, %s2285_s11 }
0x180d   : > { %p3007_p13 = scmp.ne.s32.totalorder %s2984_s28, 0  ;;  %s2381_s26 = smov [#allocation12]  }
0x180e   : > { %s2289_s21 = sshll.u32 %s2381_s26, 4  ;;  %s2290_s21 = int_to_ptr.vmem [resolvable:$false] %s2289_s21 }
0x180f   : > { %p2287_p7 = pnand %p2286_p12, %p3007_p13  ;;  %s2291_s23 = scalar_lea.vmem %s2290_s21, 256 }
0x1810   : > { %p2292_p10 = scmp.lt.s32.totalorder %s2911_s14, %s2290_s21  ;;  %p2293_p11 = scmp.lt.s32.totalorder %s2291_s23, %s2285_s11 }
0x1811   : > { %p2288_p2 = pneg %p2287_p7 }
0x1812   : > { %p2294_p1 = por %p2293_p11, %p2292_p10 }
0x1814   : > { %p2295_p3 = pnand %p2294_p1, %p2288_p2 }
0x1888   : > { %v1539_v47 = vpop.xlane.xlu1 %1538 }
0x1889   : > { %2135 = vlog2.f32 %v1539_v47 }
0x1893   : > { %v2136_v48 = vpop.eup %2135 }
0x1894   : > { %v1541_v49 = vmul.f32 0.6931472, %v2136_v48 }
0x1896   : > { %v1542_v50 = vsub.f32 %v1535_v44, %v1541_v49 }
0x1898   : > { %1543 = vst [vmem:[%s3005_s10] sm:$0xff] %v1542_v50 }
0x1899   : > { %2298 = shalt.err (!%p2295_p3)
}
0x189a   : > { %s2299_s12 = scalar_lea.hbm %s2909_s29, 128  ;;  %s2303_s18 = scalar_lea.hbm %s2967_s8, 256 }
0x189b   : > { %p2300_p6 = scmp.ne.s32.totalorder %s2909_s29, %s2299_s12  ;;  %p2304_p8 = scmp.lt.u32.totalorder %s2909_s29, %s2967_s8 }
0x189c   : > { %p2305_p4 = scmp.lt.u32.totalorder %s2303_s18, %s2299_s12  ;;  %p2307_p12 = scmp.lt.u32.totalorder %s2299_s12, %s2909_s29 }
0x189d   : > { %p2301_p5 = pnand %p2300_p6, %p3007_p13 }
0x189e   : > { %p2306_p0 = por %p2305_p4, %p2304_p8 }
0x189f   : > { %p2302_p9 = pneg %p2301_p5 }
0x18a0   : > { %p2308_p7 = por %p2307_p12, %p2306_p0 }
0x18a2   : > { %p2309_p2 = pnand %p2308_p7, %p2302_p9 }
0x18a4   : > { %2312 = shalt.err (!%p2309_p2)
}
0x18a5   : > { %2005 = dma.vmem_to_hbm [thread:$0]  (%p3007_p13), %s2911_s14, 128, %s2909_s29, %s1545_s17  }
0x18a6   : > { %p3008_p10 = scmp.eq.s32.totalorder %s2465_s0, 1 }
0x18a8   : > { %2344 = dma.done.wait (%p3008_p10), [#allocation14], 16   ;;  %p3009_p11 = pmov %p3008_p10 }
0x18aa   : > { %2346 = vsyncadd (%p3009_p11), [#allocation14], 4294967280 }
0x18ab PF: > { %s3010_s27 = sld [smem:[#allocation24_spill]]  ;;  %p2038_p1 = scmp.ge.s32.totalorder %s2365_s22, 2 }
0x18ac   : > { %s1585_s13 = sand.u32 1, %s2353_s19  }
0x18ad   : > { %s1586_s10 = scalar_lea.sflag [#allocation6], %s1585_s13 }
0x18b1   : > { %p3011_p3 = scmp.ne.s32.totalorder %s3010_s27, 0 }
0x18b3   : > { %p2025_p6 = pnand %p2038_p1, %p3011_p3 }
0x18b5   : > { %2348 = dma.done.wait (!%p2025_p6), %s1586_s10, 128  }
0x18b6   : > { %2350 = vsyncadd (!%p2025_p6), %s1586_s10, 4294967168  ;;  %s3012_s22 = sld [smem:[#allocation22_spill]]  ;;  %s3013_s28 = sld [smem:[#allocation21_spill]] }
0x18b7   : > { %s3014_s21 = sld [smem:[#allocation23_spill]]  ;;  %s3015_s19 = smov %s2357_s20 }
0x18bc   : > { %p28_p13 = scmp.ge.s32.totalorder %s3012_s22, 4   ;;  %s3016_s20 = smov %s3013_s28 }
0x18be   :  { %30 = sbr.rel (!%p28_p13) target bundleno = 19 (0x13), region = 117 }
0x18c5   :  { %1591 = vsyncpa [#allocation5], 1 }
0x18c6   :  { %1593 = vsyncpa [#allocation5 + $0x1], 1 }
0x18c7   :  { %1594 = vsyncpa [#allocation8], 1 }
0x18c8   :  { %1595 = vsyncpa [#allocation11], 1 }
0x18c9   :  { %1596 = vsyncpa [#allocation6], 1 }
0x18ca   :  { %1598 = vsyncpa [#allocation6 + $0x1], 1 }
0x18cb   :  { %1599 = vsyncpa [#allocation14], 1 }

</bundles_post_ra>
